<compile_context>
chip_gen: v5e
topology: v5e:2x2
jax: 0.10.0
libtpu: 0.0.40
codegen_flags: <defaults>
</compile_context>

<pallas_src>
import functools

import jax
import jax.numpy as jnp
import numpy as np
from jax.experimental import pallas as pl
from jax.experimental.pallas import tpu as pltpu


def _round_up(v, m):
    return (v + m - 1) // m * m


def _tpu_physical_vmem_bytes():
    """Physical per-core VMEM (128 MiB on v5e/v6e, 64 MiB on v7x)."""
    try:
        return int(pltpu.get_tpu_info().vmem_capacity_bytes)
    except Exception:
        pass
    try:
        kind = jax.devices()[0].device_kind.lower()
        if "v7" in kind:
            return 64 << 20
        return 128 << 20
    except Exception:
        return 64 << 20  # safe everywhere


def _default_act_dtype():
    """bf16 storage by default on v5e (purely HBM-bound kernel; elementwise math
    stays f32 so there is no VALU penalty), f32 elsewhere."""
    try:
        kind = jax.devices()[0].device_kind.lower()
        if "v5e" in kind or "v5 lite" in kind or "v5lite" in kind:
            return jnp.bfloat16
    except Exception:
        pass
    return jnp.float32


def _pick_tile_s(s_true, cp, act_itemsize, w_itemsize, budget_bytes):
    """Pick the spatial tile (rows of the (S, Cp) MXU matmul).

    Charges the resident weight once (single-buffered), double-buffered x/y
    tiles plus f32 temporaries per row, floors the tile at >=128 rows, rounds
    to 16 rows for bf16 (8 for f32), and prefers divisors of the aligned
    spatial extent so the tail mask is never needed."""
    row_align = 16 if act_itemsize < 4 else 8
    s_aligned = _round_up(max(int(s_true), row_align), row_align)

    fixed = cp * cp * w_itemsize + 6 * cp * 4        # weight (x1) + bias + acc + pool
    per_row = 4 * cp * act_itemsize + 2 * cp * 4     # x/y double-buffered + f32 temps
    max_rows = max((int(budget_bytes) - fixed) // per_row, 0)

    if max_rows >= s_aligned:
        return s_aligned, s_aligned                  # whole image per grid step

    t = (max_rows // row_align) * row_align
    floor_rows = min(s_aligned, max(128, row_align)) # >=128-row floor (perf review)
    t = min(max(t, floor_rows), s_aligned)

    # Prefer a tile that divides the aligned extent (no tail mask, no pad rows)
    # as long as it does not shrink the tile by more than 2x.
    best_div = 0
    d = row_align
    while d <= t:
        if s_aligned % d == 0:
            best_div = d
        d += row_align
    if best_div and best_div * 2 >= t:
        t = best_div

    return t, _round_up(int(s_true), t)


def _vmem_usage_bytes(tile_s, cp, act_itemsize, w_itemsize):
    return (cp * cp * w_itemsize              # resident weight, single-buffered
            + 2 * cp * 4                      # bias
            + 4 * tile_s * cp * act_itemsize  # x + y tiles, double-buffered
            + 2 * tile_s * cp * 4             # f32 temporaries (h, y)
            + 2 * cp * 4                      # pooled output block
            + cp * 4)                         # accumulator scratch


def _resident_spec(block_shape, index_map):
    """Single-buffer constant-index blocks (resident 1x1 weight / bias)."""
    try:
        return pl.BlockSpec(block_shape, index_map, pipeline_mode=pl.Buffered(1))
    except TypeError:
        return pl.BlockSpec(block_shape, index_map)


def _gated_conv_kernel(gate_ref, x_ref, wc_ref, bc_ref, y_ref, pool_ref, acc_ref,
                       *, tile_s, s_true, need_mask):
    # gate_ref : SMEM (N,)       f32  -- per-sample gate (softmax "on" prob)
    # x_ref    : VMEM (tile_s, Cp)    -- activation tile (act dtype)
    # wc_ref   : VMEM (Cp, Cp)        -- 1x1 conv weight (resident, single-buffered)
    # bc_ref   : VMEM (1, Cp)    f32  -- 1x1 conv bias
    # y_ref    : VMEM (tile_s, Cp)    -- output tile
    # pool_ref : VMEM (1, Cp)    f32  -- channel-sum of y (for next block's gate)
    # acc_ref  : VMEM (1, Cp)    f32  -- running channel-sum scratch
    n = pl.program_id(0)
    s = pl.program_id(1)
    last_s = pl.num_programs(1) - 1

    @pl.when(s == 0)
    def _init():
        acc_ref[...] = jnp.zeros_like(acc_ref)

    x = x_ref[...]                                            # (tile_s, Cp)
    # 2-D MXU matmul (spatial rows in the tile's leading dim), f32 accumulation.
    h = jnp.dot(x, wc_ref[...], preferred_element_type=jnp.float32)
    h = jnp.maximum(h + bc_ref[...], 0.0)                     # bias + ReLU (f32)

    g = gate_ref[n]                                           # scalar f32
    y = x.astype(jnp.float32) + g * h                         # gated residual add

    if need_mask:                                             # static (trace-time)
        # Only the final spatial tile can contain pad rows; keep the mask work
        # off the hot path of every other tile.
        @pl.when(s != last_s)
        def _store_full():
            y_ref[...] = y.astype(y_ref.dtype)
            acc_ref[...] += jnp.sum(y, axis=0, keepdims=True)

        @pl.when(s == last_s)
        def _store_tail():
            row = s * tile_s + jax.lax.broadcasted_iota(jnp.int32, y.shape, 0)
            ym = jnp.where(row < s_true, y, 0.0)              # keep pad rows zero
            y_ref[...] = ym.astype(y_ref.dtype)
            acc_ref[...] += jnp.sum(ym, axis=0, keepdims=True)
    else:
        y_ref[...] = y.astype(y_ref.dtype)
        acc_ref[...] += jnp.sum(y, axis=0, keepdims=True)

    @pl.when(s == last_s)
    def _finalize():
        pool_ref[...] = acc_ref[...]


def gated_conv_block(x, wc, bc, gate, *, tile_s, s_true, vmem_limit_bytes):
    """x: (N, S_pad, Cp) act dtype; wc: (Cp, Cp) act dtype; bc: (1, Cp) f32;
    gate: (N,) f32.  Returns (y (N,S_pad,Cp), pooled channel-sums (N,1,Cp) f32)."""
    N, S_pad, Cp = x.shape
    num_s = S_pad // tile_s
    need_mask = S_pad != s_true
    act_bytes = jnp.dtype(x.dtype).itemsize
    w_bytes = jnp.dtype(wc.dtype).itemsize

    kernel = functools.partial(_gated_conv_kernel, tile_s=tile_s, s_true=s_true,
                               need_mask=need_mask)

    cost = pl.CostEstimate(
        flops=int(2 * N * S_pad * Cp * Cp + 4 * N * S_pad * Cp),
        transcendentals=0,
        bytes_accessed=int(N * S_pad * Cp * act_bytes        # x read
                           + N * S_pad * Cp * act_bytes      # y write
                           + Cp * Cp * w_bytes               # weight read
                           + Cp * 4                          # bias read
                           + N * Cp * 4),                    # pooled sums write
    )

    y, pool = pl.pallas_call(
        kernel,
        grid=(N, num_s),
        in_specs=[
            pl.BlockSpec(memory_space=pltpu.MemorySpace.SMEM),          # gate (N,)
            pl.BlockSpec((None, tile_s, Cp), lambda n, s: (n, s, 0)),   # x tile
            _resident_spec((Cp, Cp), lambda n, s: (0, 0)),              # wc resident
            _resident_spec((1, Cp), lambda n, s: (0, 0)),               # bc resident
        ],
        out_specs=(
            pl.BlockSpec((None, tile_s, Cp), lambda n, s: (n, s, 0)),   # y tile
            pl.BlockSpec((None, 1, Cp), lambda n, s: (n, 0, 0)),        # pooled sums
        ),
        out_shape=(
            jax.ShapeDtypeStruct((N, S_pad, Cp), x.dtype),
            jax.ShapeDtypeStruct((N, 1, Cp), jnp.float32),
        ),
        scratch_shapes=[pltpu.VMEM((1, Cp), jnp.float32)],
        compiler_params=pltpu.CompilerParams(
            dimension_semantics=("parallel", "arbitrary"),
            vmem_limit_bytes=int(vmem_limit_bytes),
        ),
        cost_estimate=cost,
    )(gate, x, wc, bc)
    return y, pool


class SequentialExtPallas:
    """Mirrors Sequential_ext.forward over gated blocks: chains blocks, collects
    the (N, 2) gate activations of every block.  One instance per ResNet stage
    (all blocks in a stage share the same channel count)."""

    def __init__(self, block_params, *, act_dtype=None, vmem_budget_bytes=None):
        # block_params: list of (wc (C,C), bc (1,1,C), wg (C,2), bg (1,2)), f32.
        if act_dtype is None:
            act_dtype = _default_act_dtype()
        self.act_dtype = act_dtype

        C = block_params[0][0].shape[0]
        Cp = max(128, _round_up(C, 128))          # lane-dense channel padding
        self.C, self.Cp = C, Cp

        self.phys_vmem = _tpu_physical_vmem_bytes()
        # ~55% of physical VMEM (≈70 MiB on v5e/v6e, ≈35 MiB on v7x), leaving
        # headroom for compiler-internal scratch.
        self.vmem_budget = (int(vmem_budget_bytes) if vmem_budget_bytes is not None
                            else int(self.phys_vmem * 0.55))

        self.blocks = []
        for wc, bc, wg, bg in block_params:
            wc_p = (jnp.zeros((Cp, Cp), jnp.float32)
                    .at[:C, :C].set(jnp.asarray(wc, jnp.float32))
                    .astype(act_dtype))
            bc_p = jnp.zeros((1, Cp), jnp.float32).at[:, :C].set(
                jnp.reshape(jnp.asarray(bc, jnp.float32), (1, C)))
            wg_p = jnp.zeros((Cp, 2), jnp.float32).at[:C, :].set(
                jnp.asarray(wg, jnp.float32))
            bg_p = jnp.reshape(jnp.asarray(bg, jnp.float32), (1, 2))
            self.blocks.append((wc_p, bc_p, wg_p, bg_p))

    def __call__(self, x_nchw, temperature=1.0, openings=None):
        N, C, H, W = x_nchw.shape
        assert C == self.C, "one SequentialExtPallas instance per ResNet stage"
        S = H * W
        Cp = self.Cp
        inv_t = 1.0 / float(temperature)

        act_bytes = jnp.dtype(self.act_dtype).itemsize
        w_bytes = act_bytes
        tile_s, S_pad = _pick_tile_s(S, Cp, act_bytes, w_bytes, self.vmem_budget)
        usage = _vmem_usage_bytes(tile_s, Cp, act_bytes, w_bytes)
        vmem_limit = min(int(self.phys_vmem * 0.9),
                         max(32 << 20, self.vmem_budget, usage + (8 << 20)))

        # NCHW -> (N, S, C), pad channels/spatial once, directly in act dtype
        # (zeros stay zero through every block, so no per-block re-padding).
        x = jnp.transpose(x_nchw, (0, 2, 3, 1)).reshape(N, S, C)
        x_p = (jnp.zeros((N, S_pad, Cp), self.act_dtype)
               .at[:, :S, :C].set(x.astype(self.act_dtype)))

        # First block's global-average-pool from the unpadded view (f32 accumulate);
        # subsequent pools come fused out of the Pallas conv kernel, so the
        # activation tensor is read from HBM exactly once per block.
        pooled = jnp.zeros((N, Cp), jnp.float32).at[:, :C].set(
            jnp.sum(x, axis=1, dtype=jnp.float32) / S)

        gate_activations = []
        for wc_p, bc_p, wg_p, bg_p in self.blocks:
            logits = (pooled @ wg_p + bg_p) * inv_t           # (N, 2) tiny FC
            probs = jax.nn.softmax(logits, axis=-1)           # (N, 2)
            gate = probs[:, 1].astype(jnp.float32)            # (N,) "on" prob

            x_p, pool_sum = gated_conv_block(
                x_p, wc_p, bc_p, gate, tile_s=tile_s, s_true=S,
                vmem_limit_bytes=vmem_limit)
            pooled = pool_sum[:, 0, :] / S                    # (N, Cp) f32
            gate_activations.append(probs)

        y = x_p[:, :S, :C].astype(jnp.float32)
        y = jnp.transpose(y.reshape(N, H, W, C), (0, 3, 1, 2))
        return y, gate_activations


def _reference_block(x, wc, bc, wg, bg, temperature):
    """Pure-JAX f32 reference for one gated block ((N,S,C) layout)."""
    pooled = jnp.mean(x, axis=1)
    logits = (pooled @ wg + jnp.reshape(bg, (1, 2))) / temperature
    probs = jax.nn.softmax(logits, axis=-1)
    gate = probs[:, 1:2]
    h = jnp.maximum(jnp.einsum('nsc,cd->nsd', x, wc) + bc, 0.0)
    return x + gate[:, None, :] * h, probs


def _reference_chain(x_nchw, block_params, temperature):
    N, C, H, W = x_nchw.shape
    x = jnp.transpose(x_nchw, (0, 2, 3, 1)).reshape(N, H * W, C)
    gates = []
    for (wc, bc, wg, bg) in block_params:
        x, g = _reference_block(x, wc, bc, wg, bg, temperature)
        gates.append(g)
    y = jnp.transpose(x.reshape(N, H, W, C), (0, 3, 1, 2))
    return y, gates


if __name__ == "__main__":
    key = jax.random.PRNGKey(0)
    N, C, H, W = 2, 4, 16, 16
    num_blocks = 3
    temperature = 1.0

    key, kx = jax.random.split(key)
    x_nchw = jax.random.normal(kx, (N, C, H, W), dtype=jnp.float32)

    block_params = []
    for _ in range(num_blocks):
        key, k1, k2, k3, k4 = jax.random.split(key, 5)
        wc = jax.random.normal(k1, (C, C), dtype=jnp.float32) * 0.1
        bc = jax.random.normal(k2, (1, 1, C), dtype=jnp.float32) * 0.1
        wg = jax.random.normal(k3, (C, 2), dtype=jnp.float32) * 0.1
        bg = jax.random.normal(k4, (1, 2), dtype=jnp.float32) * 0.1
        block_params.append((wc, bc, wg, bg))

    # Pure-JAX reference of the same sequential forward.
    y_ref, ref_gates = _reference_chain(x_nchw, block_params, temperature)

    # --- f32 path: exact-ish check against the reference ---
    model_f32 = SequentialExtPallas(block_params, act_dtype=jnp.float32)
    fwd32 = jax.jit(lambda xin: model_f32(xin, temperature))
    y32, gates32 = fwd32(x_nchw)
    y32 = jax.block_until_ready(y32)
    gates32 = [jax.block_until_ready(g) for g in gates32]

    np.testing.assert_allclose(np.asarray(y32), np.asarray(y_ref),
                               rtol=1e-5, atol=1e-5)
    for g, gr in zip(gates32, ref_gates):
        np.testing.assert_allclose(np.asarray(g), np.asarray(gr),
                                   rtol=1e-5, atol=1e-5)
    assert y32.shape == (N, C, H, W)
    assert all(g.shape == (N, 2) for g in gates32)

    # --- bf16 path: bandwidth/MXU-optimized storage, loose tolerance ---
    model_bf16 = SequentialExtPallas(block_params, act_dtype=jnp.bfloat16)
    fwd16 = jax.jit(lambda xin: model_bf16(xin, temperature))
    y16, _ = fwd16(x_nchw)
    y16 = jax.block_until_ready(y16)
    np.testing.assert_allclose(np.asarray(y16), np.asarray(y_ref),
                               rtol=5e-2, atol=5e-2)

    # --- forced-small-VMEM path: exercises multi-tile grid + tail mask ---
    Hm = Wm = 15                                    # S=225 -> padded, masked tail
    key, km = jax.random.split(key)
    xm_nchw = jax.random.normal(km, (N, C, Hm, Wm), dtype=jnp.float32)
    ym_ref, _ = _reference_chain(xm_nchw, block_params, temperature)
    model_small = SequentialExtPallas(block_params, act_dtype=jnp.float32,
                                      vmem_budget_bytes=4096)
    fwd_small = jax.jit(lambda xin: model_small(xin, temperature))
    ym, _ = fwd_small(xm_nchw)
    ym = jax.block_until_ready(ym)
    np.testing.assert_allclose(np.asarray(ym), np.asarray(ym_ref),
                               rtol=1e-5, atol=1e-5)

    print("KERNEL_OK")
</pallas_src>

<mosaic_0001>
module attributes {stable_mosaic.version = 11 : i64} {
  func.func @_gated_conv_kernel(%arg0: i32, %arg1: i32, %arg2: memref<2xf32, #tpu.memory_space<smem>>, %arg3: memref<1x256x128xf32, #tpu.memory_space<vmem>>, %arg4: memref<128x128xf32, #tpu.memory_space<vmem>>, %arg5: memref<1x128xf32, #tpu.memory_space<vmem>>, %arg6: memref<1x256x128xf32, #tpu.memory_space<vmem>>, %arg7: memref<1x1x128xf32, #tpu.memory_space<vmem>>, %arg8: memref<1x128xf32, #tpu.memory_space<vmem>>) attributes {dimension_semantics = [#tpu.dimension_semantics<parallel>, #tpu.dimension_semantics<arbitrary>], iteration_bounds = array<i64: 2, 1>, scalar_prefetch = 0 : i64, scratch_operands = 1 : i64, tpu.core_type = #tpu.core_type<tc>, window_params = [{transform_indices = @transform_0, window_bounds = array<i64: 2>}, {transform_indices = @transform_1, window_bounds = array<i64: 1, 256, 128>}, {pipeline_mode = #tpu.pipeline_mode<synchronous>, transform_indices = @transform_2, window_bounds = array<i64: 128, 128>}, {pipeline_mode = #tpu.pipeline_mode<synchronous>, transform_indices = @transform_3, window_bounds = array<i64: 1, 128>}, {transform_indices = @transform_4, window_bounds = array<i64: 1, 256, 128>}, {transform_indices = @transform_5, window_bounds = array<i64: 1, 1, 128>}]} {
    %c0_i32 = arith.constant 0 : i32
    %0 = arith.cmpi eq, %arg1, %c0_i32 : i32
    %1 = arith.extui %0 : i1 to i32
    %c0_i32_0 = arith.constant 0 : i32
    %2 = arith.cmpi ne, %1, %c0_i32_0 : i32
    scf.if %2 {
      %cst_18 = arith.constant 0.000000e+00 : f32
      %28 = vector.broadcast %cst_18 : f32 to vector<1x128xf32>
      %c0_19 = arith.constant 0 : index
      %c0_20 = arith.constant 0 : index
      %29 = vector.load %arg8[%c0_19, %c0_20] : memref<1x128xf32, #tpu.memory_space<vmem>>, vector<1x128xf32>
      tpu.vector_store %arg8[%c0_19, %c0_20], %28 {strides = array<i32>} : memref<1x128xf32, #tpu.memory_space<vmem>>, vector<1x128xf32>,
    } else {
    }
    %c0 = arith.constant 0 : index
    %c0_1 = arith.constant 0 : index
    %c0_2 = arith.constant 0 : index
    %3 = vector.load %arg3[%c0, %c0_1, %c0_2] : memref<1x256x128xf32, #tpu.memory_space<vmem>>, vector<1x256x128xf32>
    %4 = vector.shape_cast %3 : vector<1x256x128xf32> to vector<256x128xf32>
    %c0_3 = arith.constant 0 : index
    %c0_4 = arith.constant 0 : index
    %5 = vector.load %arg4[%c0_3, %c0_4] : memref<128x128xf32, #tpu.memory_space<vmem>>, vector<128x128xf32>
    %cst = arith.constant dense<0.000000e+00> : vector<256x128xf32>
    %6 = tpu.matmul %4, %5, %cst {dimension_numbers = #tpu.dot_dimension_numbers<[1], [0], [0], [1], [0, 0, 1, 1], [], []>} : vector<256x128xf32>, vector<128x128xf32>, vector<256x128xf32> -> vector<256x128xf32>
    %c0_5 = arith.constant 0 : index
    %c0_6 = arith.constant 0 : index
    %7 = vector.load %arg5[%c0_5, %c0_6] : memref<1x128xf32, #tpu.memory_space<vmem>>, vector<1x128xf32>
    %8 = vector.broadcast %7 : vector<1x128xf32> to vector<256x128xf32>
    %9 = arith.addf %6, %8 : vector<256x128xf32>
    %cst_7 = arith.constant 0.000000e+00 : f32
    %10 = vector.broadcast %cst_7 : f32 to vector<256x128xf32>
    %11 = arith.maximumf %9, %10 : vector<256x128xf32>
    %12 = arith.index_cast %arg0 : i32 to index
    %13 = memref.load %arg2[%12] : memref<2xf32, #tpu.memory_space<smem>>
    %14 = vector.broadcast %13 : f32 to vector<256x128xf32>
    %15 = arith.mulf %14, %11 : vector<256x128xf32>
    %16 = arith.addf %4, %15 : vector<256x128xf32>
    %c0_8 = arith.constant 0 : index
    %c0_9 = arith.constant 0 : index
    %c0_10 = arith.constant 0 : index
    %17 = vector.load %arg6[%c0_8, %c0_9, %c0_10] : memref<1x256x128xf32, #tpu.memory_space<vmem>>, vector<1x256x128xf32>
    %18 = vector.shape_cast %17 : vector<1x256x128xf32> to vector<256x128xf32>
    %19 = vector.shape_cast %16 : vector<256x128xf32> to vector<1x256x128xf32>
    tpu.vector_store %arg6[%c0_8, %c0_9, %c0_10], %19 {strides = array<i32>} : memref<1x256x128xf32, #tpu.memory_space<vmem>>, vector<1x256x128xf32>,
    %c0_11 = arith.constant 0 : index
    %c0_12 = arith.constant 0 : index
    %20 = vector.load %arg8[%c0_11, %c0_12] : memref<1x128xf32, #tpu.memory_space<vmem>>, vector<1x128xf32>
    %cst_13 = arith.constant dense<0.000000e+00> : vector<128xf32>
    %21 = vector.multi_reduction <add>, %16, %cst_13 [0] : vector<256x128xf32> to vector<128xf32>
    %22 = vector.shape_cast %21 : vector<128xf32> to vector<1x128xf32>
    %23 = arith.addf %20, %22 : vector<1x128xf32>
    %c0_14 = arith.constant 0 : index
    %c0_15 = arith.constant 0 : index
    %24 = vector.load %arg8[%c0_14, %c0_15] : memref<1x128xf32, #tpu.memory_space<vmem>>, vector<1x128xf32>
    tpu.vector_store %arg8[%c0_14, %c0_15], %23 {strides = array<i32>} : memref<1x128xf32, #tpu.memory_space<vmem>>, vector<1x128xf32>,
    %c0_i32_16 = arith.constant 0 : i32
    %25 = arith.cmpi eq, %arg1, %c0_i32_16 : i32
    %26 = arith.extui %25 : i1 to i32
    %c0_i32_17 = arith.constant 0 : i32
    %27 = arith.cmpi ne, %26, %c0_i32_17 : i32
    scf.if %27 {
      %c0_18 = arith.constant 0 : index
      %c0_19 = arith.constant 0 : index
      %28 = vector.load %arg8[%c0_18, %c0_19] : memref<1x128xf32, #tpu.memory_space<vmem>>, vector<1x128xf32>
      %c0_20 = arith.constant 0 : index
      %c0_21 = arith.constant 0 : index
      %c0_22 = arith.constant 0 : index
      %29 = vector.load %arg7[%c0_20, %c0_21, %c0_22] : memref<1x1x128xf32, #tpu.memory_space<vmem>>, vector<1x1x128xf32>
      %30 = vector.shape_cast %29 : vector<1x1x128xf32> to vector<1x128xf32>
      %31 = vector.shape_cast %28 : vector<1x128xf32> to vector<1x1x128xf32>
      tpu.vector_store %arg7[%c0_20, %c0_21, %c0_22], %31 {strides = array<i32>} : memref<1x1x128xf32, #tpu.memory_space<vmem>>, vector<1x1x128xf32>,
    } else {
    }
    return
  }
  func.func @transform_0(%arg0: i32, %arg1: i32) -> i32 {
    %c0_i32 = arith.constant 0 : i32
    %c0_i32_0 = arith.constant 0 : i32
    return %c0_i32 : i32
  }
  func.func @transform_1(%arg0: i32, %arg1: i32) -> (i32, i32, i32) {
    %c0_i32 = arith.constant 0 : i32
    %c0_i32_0 = arith.constant 0 : i32
    return %arg0, %arg1, %c0_i32 : i32, i32, i32
  }
  func.func @transform_2(%arg0: i32, %arg1: i32) -> (i32, i32) {
    %c0_i32 = arith.constant 0 : i32
    %c0_i32_0 = arith.constant 0 : i32
    %c0_i32_1 = arith.constant 0 : i32
    return %c0_i32, %c0_i32_0 : i32, i32
  }
  func.func @transform_3(%arg0: i32, %arg1: i32) -> (i32, i32) {
    %c0_i32 = arith.constant 0 : i32
    %c0_i32_0 = arith.constant 0 : i32
    %c0_i32_1 = arith.constant 0 : i32
    return %c0_i32, %c0_i32_0 : i32, i32
  }
  func.func @transform_4(%arg0: i32, %arg1: i32) -> (i32, i32, i32) {
    %c0_i32 = arith.constant 0 : i32
    %c0_i32_0 = arith.constant 0 : i32
    return %arg0, %arg1, %c0_i32 : i32, i32, i32
  }
  func.func @transform_5(%arg0: i32, %arg1: i32) -> (i32, i32, i32) {
    %c0_i32 = arith.constant 0 : i32
    %c0_i32_0 = arith.constant 0 : i32
    %c0_i32_1 = arith.constant 0 : i32
    return %arg0, %c0_i32, %c0_i32_0 : i32, i32, i32
  }
}

module attributes {stable_mosaic.version = 11 : i64} {
  func.func @_gated_conv_kernel(%arg0: i32, %arg1: i32, %arg2: memref<2xf32, #tpu.memory_space<smem>>, %arg3: memref<1x256x128xf32, #tpu.memory_space<vmem>>, %arg4: memref<128x128xf32, #tpu.memory_space<vmem>>, %arg5: memref<1x128xf32, #tpu.memory_space<vmem>>, %arg6: memref<1x256x128xf32, #tpu.memory_space<vmem>>, %arg7: memref<1x1x128xf32, #tpu.memory_space<vmem>>, %arg8: memref<1x128xf32, #tpu.memory_space<vmem>>) attributes {dimension_semantics = [#tpu.dimension_semantics<parallel>, #tpu.dimension_semantics<arbitrary>], iteration_bounds = array<i64: 2, 1>, scalar_prefetch = 0 : i64, scratch_operands = 1 : i64, tpu.core_type = #tpu.core_type<tc>, window_params = [{transform_indices = @transform_0, window_bounds = array<i64: 2>}, {transform_indices = @transform_1, window_bounds = array<i64: 1, 256, 128>}, {pipeline_mode = #tpu.pipeline_mode<synchronous>, transform_indices = @transform_2, window_bounds = array<i64: 128, 128>}, {pipeline_mode = #tpu.pipeline_mode<synchronous>, transform_indices = @transform_3, window_bounds = array<i64: 1, 128>}, {transform_indices = @transform_4, window_bounds = array<i64: 1, 256, 128>}, {transform_indices = @transform_5, window_bounds = array<i64: 1, 1, 128>}]} {
    %c0_i32 = arith.constant 0 : i32
    %0 = arith.cmpi eq, %arg1, %c0_i32 : i32
    %1 = arith.extui %0 : i1 to i32
    %c0_i32_0 = arith.constant 0 : i32
    %2 = arith.cmpi ne, %1, %c0_i32_0 : i32
    scf.if %2 {
      %cst_18 = arith.constant 0.000000e+00 : f32
      %28 = vector.broadcast %cst_18 : f32 to vector<1x128xf32>
      %c0_19 = arith.constant 0 : index
      %c0_20 = arith.constant 0 : index
      %29 = vector.load %arg8[%c0_19, %c0_20] : memref<1x128xf32, #tpu.memory_space<vmem>>, vector<1x128xf32>
      tpu.vector_store %arg8[%c0_19, %c0_20], %28 {strides = array<i32>} : memref<1x128xf32, #tpu.memory_space<vmem>>, vector<1x128xf32>,
    } else {
    }
    %c0 = arith.constant 0 : index
    %c0_1 = arith.constant 0 : index
    %c0_2 = arith.constant 0 : index
    %3 = vector.load %arg3[%c0, %c0_1, %c0_2] : memref<1x256x128xf32, #tpu.memory_space<vmem>>, vector<1x256x128xf32>
    %4 = vector.shape_cast %3 : vector<1x256x128xf32> to vector<256x128xf32>
    %c0_3 = arith.constant 0 : index
    %c0_4 = arith.constant 0 : index
    %5 = vector.load %arg4[%c0_3, %c0_4] : memref<128x128xf32, #tpu.memory_space<vmem>>, vector<128x128xf32>
    %cst = arith.constant dense<0.000000e+00> : vector<256x128xf32>
    %6 = tpu.matmul %4, %5, %cst {dimension_numbers = #tpu.dot_dimension_numbers<[1], [0], [0], [1], [0, 0, 1, 1], [], []>} : vector<256x128xf32>, vector<128x128xf32>, vector<256x128xf32> -> vector<256x128xf32>
    %c0_5 = arith.constant 0 : index
    %c0_6 = arith.constant 0 : index
    %7 = vector.load %arg5[%c0_5, %c0_6] : memref<1x128xf32, #tpu.memory_space<vmem>>, vector<1x128xf32>
    %8 = vector.broadcast %7 : vector<1x128xf32> to vector<256x128xf32>
    %9 = arith.addf %6, %8 : vector<256x128xf32>
    %cst_7 = arith.constant 0.000000e+00 : f32
    %10 = vector.broadcast %cst_7 : f32 to vector<256x128xf32>
    %11 = arith.maximumf %9, %10 : vector<256x128xf32>
    %12 = arith.index_cast %arg0 : i32 to index
    %13 = memref.load %arg2[%12] : memref<2xf32, #tpu.memory_space<smem>>
    %14 = vector.broadcast %13 : f32 to vector<256x128xf32>
    %15 = arith.mulf %14, %11 : vector<256x128xf32>
    %16 = arith.addf %4, %15 : vector<256x128xf32>
    %c0_8 = arith.constant 0 : index
    %c0_9 = arith.constant 0 : index
    %c0_10 = arith.constant 0 : index
    %17 = vector.load %arg6[%c0_8, %c0_9, %c0_10] : memref<1x256x128xf32, #tpu.memory_space<vmem>>, vector<1x256x128xf32>
    %18 = vector.shape_cast %17 : vector<1x256x128xf32> to vector<256x128xf32>
    %19 = vector.shape_cast %16 : vector<256x128xf32> to vector<1x256x128xf32>
    tpu.vector_store %arg6[%c0_8, %c0_9, %c0_10], %19 {strides = array<i32>} : memref<1x256x128xf32, #tpu.memory_space<vmem>>, vector<1x256x128xf32>,
    %c0_11 = arith.constant 0 : index
    %c0_12 = arith.constant 0 : index
    %20 = vector.load %arg8[%c0_11, %c0_12] : memref<1x128xf32, #tpu.memory_space<vmem>>, vector<1x128xf32>
    %cst_13 = arith.constant dense<0.000000e+00> : vector<128xf32>
    %21 = vector.multi_reduction <add>, %16, %cst_13 [0] : vector<256x128xf32> to vector<128xf32>
    %22 = vector.shape_cast %21 : vector<128xf32> to vector<1x128xf32>
    %23 = arith.addf %20, %22 : vector<1x128xf32>
    %c0_14 = arith.constant 0 : index
    %c0_15 = arith.constant 0 : index
    %24 = vector.load %arg8[%c0_14, %c0_15] : memref<1x128xf32, #tpu.memory_space<vmem>>, vector<1x128xf32>
    tpu.vector_store %arg8[%c0_14, %c0_15], %23 {strides = array<i32>} : memref<1x128xf32, #tpu.memory_space<vmem>>, vector<1x128xf32>,
    %c0_i32_16 = arith.constant 0 : i32
    %25 = arith.cmpi eq, %arg1, %c0_i32_16 : i32
    %26 = arith.extui %25 : i1 to i32
    %c0_i32_17 = arith.constant 0 : i32
    %27 = arith.cmpi ne, %26, %c0_i32_17 : i32
    scf.if %27 {
      %c0_18 = arith.constant 0 : index
      %c0_19 = arith.constant 0 : index
      %28 = vector.load %arg8[%c0_18, %c0_19] : memref<1x128xf32, #tpu.memory_space<vmem>>, vector<1x128xf32>
      %c0_20 = arith.constant 0 : index
      %c0_21 = arith.constant 0 : index
      %c0_22 = arith.constant 0 : index
      %29 = vector.load %arg7[%c0_20, %c0_21, %c0_22] : memref<1x1x128xf32, #tpu.memory_space<vmem>>, vector<1x1x128xf32>
      %30 = vector.shape_cast %29 : vector<1x1x128xf32> to vector<1x128xf32>
      %31 = vector.shape_cast %28 : vector<1x128xf32> to vector<1x1x128xf32>
      tpu.vector_store %arg7[%c0_20, %c0_21, %c0_22], %31 {strides = array<i32>} : memref<1x1x128xf32, #tpu.memory_space<vmem>>, vector<1x1x128xf32>,
    } else {
    }
    return
  }
  func.func @transform_0(%arg0: i32, %arg1: i32) -> i32 {
    %c0_i32 = arith.constant 0 : i32
    %c0_i32_0 = arith.constant 0 : i32
    return %c0_i32 : i32
  }
  func.func @transform_1(%arg0: i32, %arg1: i32) -> (i32, i32, i32) {
    %c0_i32 = arith.constant 0 : i32
    %c0_i32_0 = arith.constant 0 : i32
    return %arg0, %arg1, %c0_i32 : i32, i32, i32
  }
  func.func @transform_2(%arg0: i32, %arg1: i32) -> (i32, i32) {
    %c0_i32 = arith.constant 0 : i32
    %c0_i32_0 = arith.constant 0 : i32
    %c0_i32_1 = arith.constant 0 : i32
    return %c0_i32, %c0_i32_0 : i32, i32
  }
  func.func @transform_3(%arg0: i32, %arg1: i32) -> (i32, i32) {
    %c0_i32 = arith.constant 0 : i32
    %c0_i32_0 = arith.constant 0 : i32
    %c0_i32_1 = arith.constant 0 : i32
    return %c0_i32, %c0_i32_0 : i32, i32
  }
  func.func @transform_4(%arg0: i32, %arg1: i32) -> (i32, i32, i32) {
    %c0_i32 = arith.constant 0 : i32
    %c0_i32_0 = arith.constant 0 : i32
    return %arg0, %arg1, %c0_i32 : i32, i32, i32
  }
  func.func @transform_5(%arg0: i32, %arg1: i32) -> (i32, i32, i32) {
    %c0_i32 = arith.constant 0 : i32
    %c0_i32_0 = arith.constant 0 : i32
    %c0_i32_1 = arith.constant 0 : i32
    return %arg0, %c0_i32, %c0_i32_0 : i32, i32, i32
  }
}

</mosaic_0001>

<bundles_post_ra>
// kernel: _lambda_.3
= control target key start
LH: loop header
LB: loop body
LE: loop exit
PB: predicated region body
PF: predicated region fallthrough
CT: control target
= control target key end

     0   :  { %11 = vsyncpa [#allocation4], 0  ;;  %s931_s18 = smov 0   ;;  %s933_s19 = smov 0   ;;  %s1387_s0 = inlined_call_operand.vmem [shape: f32[2], index: 0, kind: input, shape index: {}]   ;;  %s1388_s1 = inlined_call_operand.vmem [shape: f32[2,256,128], index: 1, kind: input, shape index: {}]   ;;  %s1389_s2 = inlined_call_operand.vmem [shape: f32[128,128], index: 2, kind: input, shape index: {}]   ;;  %s1390_s3 = inlined_call_operand.vmem [shape: f32[1,128], index: 3, kind: input, shape index: {}]   ;;  %s1391_s4 = inlined_call_operand.vmem [shape: f32[2,256,128], index: 4, kind: output, shape index: {0}]   ;;  %s1392_s5 = inlined_call_operand.vmem [shape: f32[2,1,128], index: 5, kind: output, shape index: {1}]  }
   0x1   :  { %s935_s20 = smov 0  }
   0x2 LB: > { %s756_s21 = sadd.s32 4294967295, %s897_s20   ;;  %s29_s22 = sadd.s32 1, %s893_s19  ;;  %s897_s20 = sphi %s935_s20, %s17_s20   ;;  %s893_s19 = sphi %s933_s19, %s1394_s19   ;;  %s889_s18 = sphi %s931_s18, %s1393_s18  }
   0x3   : > { %p31_p0 = scmp.ge.s32.totalorder %s29_s22, 2  ;;  %p758_p1 = scmp.ge.s32.totalorder %s897_s20, 1 }
   0x4   : > { %p179_p2 = scmp.lt.s32.totalorder %s897_s20, 3  ;;  %p827_p4 = scmp.eq.s32.totalorder %s756_s21, 0 }
   0x5   : > { %s1396_s22 = smov (%p31_p0, %s29_s22), 0  ;;  %s191_s25 = sshll.u32 %s1387_s0, 4  ;;  %s192_s25 = int_to_ptr.vmem [resolvable:$true] %s191_s25 }
   0x6   : > { %p180_p3 = pnand %p758_p1, %p179_p2  ;;  %s899_s26 = smov [#allocation3]  }
   0x8   : > { %p823_p5 = pneg %p180_p3  ;;  %223 = sbr.rel (%p180_p3) target bundleno = 311 (0x137), region = 36 }
   0xa   : > { %p824_p6 = pnand %p827_p4, %p823_p5 }
   0xc   : > { %826 = dma.vmem_to_smem (!%p824_p6), %s192_s25, 16, %s899_s26, [#allocation4]  }
   0xd   : > { %884 = dma.done.wait (%p827_p4), [#allocation4], 16  }
   0xe   : > { %886 = vsyncadd (%p827_p4), [#allocation4], 4294967280 }
   0xf   : > { %230 = sfence }
  0x10   : > { %v339_v0 = vld [vmem:[%s1389_s2 + $0x78] sm:$0xff]  ;;  %v338_v1 = vld [vmem:[%s1389_s2 + $0x70] sm:$0xff]  ;;  %v337_v2 = vld [vmem:[%s1389_s2 + $0x68] sm:$0xff]  ;;  %p265_p7 = scmp.lt.s32.totalorder %s889_s18, 1  ;;  %s489_s21 = sld [smem:[#allocation3 + %s889_s18]] }
  0x11   : > { %344 = vmatpush.msra.mxu0 %v339_v0  ;;  %771 = vmatpush.msra.mxu1 %v339_v0  ;;  %v336_v3 = vld [vmem:[%s1389_s2 + $0x60] sm:$0xff]  ;;  %v335_v4 = vld [vmem:[%s1389_s2 + $0x58] sm:$0xff]  ;;  %v334_v5 = vld [vmem:[%s1389_s2 + $0x50] sm:$0xff] }
  0x12   : > { %772 = vmatpush.msra.mxu2 %v339_v0  ;;  %773 = vmatpush.msra.mxu3 %v339_v0  ;;  %v333_v6 = vld [vmem:[%s1389_s2 + $0x48] sm:$0xff]  ;;  %v332_v7 = vld [vmem:[%s1389_s2 + $0x40] sm:$0xff]  ;;  %v331_v8 = vld [vmem:[%s1389_s2 + $0x38] sm:$0xff]  ;;  %s990_s28 = scalar_select %p265_p7, %s889_s18, 1 }
  0x13   : > { %345 = vmatpush.msra.mxu0 %v338_v1  ;;  %774 = vmatpush.msra.mxu1 %v338_v1  ;;  %v330_v9 = vld [vmem:[%s1389_s2 + $0x30] sm:$0xff]  ;;  %v329_v10 = vld [vmem:[%s1389_s2 + $0x28] sm:$0xff]  ;;  %v328_v11 = vld [vmem:[%s1389_s2 + $0x20] sm:$0xff] }
  0x14   : > { %775 = vmatpush.msra.mxu2 %v338_v1  ;;  %776 = vmatpush.msra.mxu3 %v338_v1  ;;  %v327_v12 = vld [vmem:[%s1389_s2 + $0x18] sm:$0xff]  ;;  %s769_s8 = sshll.u32 %s990_s28, 8  ;;  %v326_v13 = vld [vmem:[%s1389_s2 + $0x10] sm:$0xff]  ;;  %v325_v14 = vld [vmem:[%s1389_s2 + $0x8] sm:$0xff]  ;;  %s286_s30 = scalar_lea.vmem %s1392_s5, %s990_s28 }
  0x15   : > { %346 = vmatpush.msra.mxu0 %v337_v2  ;;  %777 = vmatpush.msra.mxu1 %v337_v2  ;;  %s1010_s15 = scalar_lea.vmem %s1388_s1, %s769_s8  ;;  %v324_v15 = vld [vmem:[%s1389_s2] sm:$0xff]  ;;  %s1160_s26 = scalar_lea.vmem %s1391_s4, %s769_s8 }
  0x16   : > { %778 = vmatpush.msra.mxu2 %v337_v2  ;;  %779 = vmatpush.msra.mxu3 %v337_v2  ;;  %v1016_v16 = vld [vmem:[%s1010_s15] sm:$0xff]  ;;  %v1028_v19 = vld [vmem:[%s1010_s15 + $0x8] sm:$0xff]  ;;  %v1044_v23 = vld [vmem:[%s1010_s15 + $0x10] sm:$0xff]  ;;  %v1151_v53 = vstv %s489_s21 }
  0x17   : > { %347 = vmatpush.msra.mxu0 %v336_v3  ;;  %780 = vmatpush.msra.mxu1 %v336_v3  ;;  %v1019_v17 = vld [vmem:[%s1010_s15 + $0x40] sm:$0xff]  ;;  %v1031_v20 = vld [vmem:[%s1010_s15 + $0x48] sm:$0xff]  ;;  %v1047_v24 = vld [vmem:[%s1010_s15 + $0x50] sm:$0xff] }
  0x18   : > { %781 = vmatpush.msra.mxu2 %v336_v3  ;;  %782 = vmatpush.msra.mxu3 %v336_v3  ;;  %v1022_v18 = vld [vmem:[%s1010_s15 + $0x80] sm:$0xff]  ;;  %v1034_v21 = vld [vmem:[%s1010_s15 + $0x88] sm:$0xff]  ;;  %v1050_v25 = vld [vmem:[%s1010_s15 + $0x90] sm:$0xff] }
  0x19   : > { %348 = vmatpush.msra.mxu0 %v335_v4  ;;  %783 = vmatpush.msra.mxu1 %v335_v4  ;;  %v1039_v22 = vld [vmem:[%s1010_s15 + $0xc0] sm:$0xff]  ;;  %v1055_v26 = vld [vmem:[%s1010_s15 + $0xc8] sm:$0xff]  ;;  %v1060_v27 = vld [vmem:[%s1010_s15 + $0x18] sm:$0xff] }
  0x1a   : > { %784 = vmatpush.msra.mxu2 %v335_v4  ;;  %785 = vmatpush.msra.mxu3 %v335_v4  ;;  %v1063_v28 = vld [vmem:[%s1010_s15 + $0x58] sm:$0xff]  ;;  %v1071_v30 = vld [vmem:[%s1010_s15 + $0xd0] sm:$0xff]  ;;  %v1076_v31 = vld [vmem:[%s1010_s15 + $0x20] sm:$0xff] }
  0x1b   : > { %349 = vmatpush.msra.mxu0 %v334_v5  ;;  %786 = vmatpush.msra.mxu1 %v334_v5  ;;  %v1066_v29 = vld [vmem:[%s1010_s15 + $0x98] sm:$0xff]  ;;  %v1079_v32 = vld [vmem:[%s1010_s15 + $0x60] sm:$0xff]  ;;  %v1092_v35 = vld [vmem:[%s1010_s15 + $0x28] sm:$0xff] }
  0x1c   : > { %787 = vmatpush.msra.mxu2 %v334_v5  ;;  %788 = vmatpush.msra.mxu3 %v334_v5  ;;  %v1082_v33 = vld [vmem:[%s1010_s15 + $0xd8] sm:$0xff]  ;;  %v1085_v34 = vld [vmem:[%s1010_s15 + $0xa0] sm:$0xff]  ;;  %v1095_v36 = vld [vmem:[%s1010_s15 + $0x68] sm:$0xff] }
  0x1d   : > { %350 = vmatpush.msra.mxu0 %v333_v6  ;;  %789 = vmatpush.msra.mxu1 %v333_v6  ;;  %v1098_v37 = vld [vmem:[%s1010_s15 + $0xe0] sm:$0xff]  ;;  %v1101_v38 = vld [vmem:[%s1010_s15 + $0xa8] sm:$0xff]  ;;  %v1108_v39 = vld [vmem:[%s1010_s15 + $0x30] sm:$0xff] }
  0x1e   : > { %790 = vmatpush.msra.mxu2 %v333_v6  ;;  %791 = vmatpush.msra.mxu3 %v333_v6  ;;  %v1111_v40 = vld [vmem:[%s1010_s15 + $0x70] sm:$0xff]  ;;  %v1114_v41 = vld [vmem:[%s1010_s15 + $0xe8] sm:$0xff]  ;;  %v1124_v43 = vld [vmem:[%s1010_s15 + $0x38] sm:$0xff] }
  0x1f   : > { %351 = vmatpush.msra.mxu0 %v332_v7  ;;  %792 = vmatpush.msra.mxu1 %v332_v7  ;;  %v1117_v42 = vld [vmem:[%s1010_s15 + $0xb0] sm:$0xff]  ;;  %v1127_v44 = vld [vmem:[%s1010_s15 + $0x78] sm:$0xff]  ;;  %v1147_v48 = vld [vmem:[%s1390_s3] ss:$0 sm:$0xff] }
  0x20   : > { %793 = vmatpush.msra.mxu2 %v332_v7  ;;  %794 = vmatpush.msra.mxu3 %v332_v7  ;;  %v1130_v45 = vld [vmem:[%s1010_s15 + $0xf0] sm:$0xff]  ;;  %v1133_v46 = vld [vmem:[%s1010_s15 + $0xb8] sm:$0xff] }
  0x21   : > { %352 = vmatpush.msra.mxu0 %v331_v8  ;;  %795 = vmatpush.msra.mxu1 %v331_v8  ;;  %v1140_v47 = vld [vmem:[%s1010_s15 + $0xf8] sm:$0xff] }
  0x22   : > { %796 = vmatpush.msra.mxu2 %v331_v8  ;;  %797 = vmatpush.msra.mxu3 %v331_v8 }
  0x23   : > { %353 = vmatpush.msra.mxu0 %v330_v9  ;;  %798 = vmatpush.msra.mxu1 %v330_v9 }
  0x24   : > { %799 = vmatpush.msra.mxu2 %v330_v9  ;;  %800 = vmatpush.msra.mxu3 %v330_v9 }
  0x25   : > { %354 = vmatpush.msra.mxu0 %v329_v10  ;;  %801 = vmatpush.msra.mxu1 %v329_v10 }
  0x26   : > { %802 = vmatpush.msra.mxu2 %v329_v10  ;;  %803 = vmatpush.msra.mxu3 %v329_v10 }
  0x27   : > { %355 = vmatpush.msra.mxu0 %v328_v11  ;;  %804 = vmatpush.msra.mxu1 %v328_v11 }
  0x28   : > { %805 = vmatpush.msra.mxu2 %v328_v11  ;;  %806 = vmatpush.msra.mxu3 %v328_v11 }
  0x29   : > { %356 = vmatpush.msra.mxu0 %v327_v12  ;;  %807 = vmatpush.msra.mxu1 %v327_v12 }
  0x2a   : > { %808 = vmatpush.msra.mxu2 %v327_v12  ;;  %809 = vmatpush.msra.mxu3 %v327_v12 }
  0x2b   : > { %357 = vmatpush.msra.mxu0 %v326_v13  ;;  %810 = vmatpush.msra.mxu1 %v326_v13 }
  0x2c   : > { %811 = vmatpush.msra.mxu2 %v326_v13  ;;  %812 = vmatpush.msra.mxu3 %v326_v13 }
  0x2d   : > { %358 = vmatpush.msra.mxu0 %v325_v14  ;;  %813 = vmatpush.msra.mxu1 %v325_v14 }
  0x2e   : > { %814 = vmatpush.msra.mxu2 %v325_v14  ;;  %815 = vmatpush.msra.mxu3 %v325_v14 }
  0x2f   : > { %359 = vmatpush.msra.mxu0 %v324_v15  ;;  %816 = vmatpush.msra.mxu1 %v324_v15 }
  0x30   : > { %360 = vmatmul.f32.vlgmr.msra.gmra.mxu0 %v1016_v16  ;;  %384 = vmatmul.f32.vlgmr.msra.gmra.mxu1 %v1019_v17 }
  0x31   : > { %817 = vmatpush.msra.mxu2 %v324_v15  ;;  %818 = vmatpush.msra.mxu3 %v324_v15 }
  0x32   : > { %408 = vmatmul.f32.vlgmr.msra.gmra.mxu2 %v1022_v18  ;;  %432 = vmatmul.f32.vlgmr.msra.gmra.mxu3 %v1039_v22 }
  0x38   : > { %363 = vmatmul.f32.gmra.mxu0 %v1028_v19  ;;  %387 = vmatmul.f32.gmra.mxu1 %v1031_v20 }
  0x3a   : > { %411 = vmatmul.f32.gmra.mxu2 %v1034_v21  ;;  %435 = vmatmul.f32.gmra.mxu3 %v1055_v26 }
  0x40   : > { %366 = vmatmul.f32.gmra.mxu0 %v1044_v23  ;;  %390 = vmatmul.f32.gmra.mxu1 %v1047_v24 }
  0x42   : > { %414 = vmatmul.f32.gmra.mxu2 %v1050_v25  ;;  %438 = vmatmul.f32.gmra.mxu3 %v1071_v30 }
  0x48   : > { %369 = vmatmul.f32.gmra.mxu0 %v1060_v27  ;;  %393 = vmatmul.f32.gmra.mxu1 %v1063_v28 }
  0x4a   : > { %417 = vmatmul.f32.gmra.mxu2 %v1066_v29  ;;  %441 = vmatmul.f32.gmra.mxu3 %v1082_v33 }
  0x50   : > { %372 = vmatmul.f32.gmra.mxu0 %v1076_v31  ;;  %396 = vmatmul.f32.gmra.mxu1 %v1079_v32 }
  0x52   : > { %420 = vmatmul.f32.gmra.mxu2 %v1085_v34  ;;  %444 = vmatmul.f32.gmra.mxu3 %v1098_v37 }
  0x58   : > { %375 = vmatmul.f32.gmra.mxu0 %v1092_v35  ;;  %399 = vmatmul.f32.gmra.mxu1 %v1095_v36 }
  0x5a   : > { %423 = vmatmul.f32.gmra.mxu2 %v1101_v38  ;;  %447 = vmatmul.f32.gmra.mxu3 %v1114_v41 }
  0x60   : > { %378 = vmatmul.f32.gmra.mxu0 %v1108_v39  ;;  %402 = vmatmul.f32.gmra.mxu1 %v1111_v40 }
  0x62   : > { %426 = vmatmul.f32.gmra.mxu2 %v1117_v42  ;;  %450 = vmatmul.f32.gmra.mxu3 %v1130_v45 }
  0x68   : > { %381 = vmatmul.f32.gmra.mxu0 %v1124_v43  ;;  %405 = vmatmul.f32.gmra.mxu1 %v1127_v44 }
  0x6a   : > { %429 = vmatmul.f32.gmra.mxu2 %v1133_v46  ;;  %453 = vmatmul.f32.gmra.mxu3 %v1140_v47 }
  0xad   : > { %v361_v49 = vpop.f32.mrf.mxu0  ;;  %v385_v50 = vpop.f32.mrf.mxu1 }
  0xae   : > { %v362_v51 = vadd.f32 %v1147_v48, %v361_v49  ;;  %v386_v52 = vadd.f32 %v1147_v48, %v385_v50 }
  0xb0   : > { %v457_v54 = vmax.f32 %v362_v51, 0.0  ;;  %v465_v55 = vmax.f32 %v386_v52, 0.0 }
  0xb2   : > { %v491_v56 = vmul.f32 %v1151_v53, %v457_v54  ;;  %v499_v57 = vmul.f32 %v1151_v53, %v465_v55 }
  0xb4   : > { %v1163_v58 = vadd.f32 %v491_v56, %v1016_v16  ;;  %v1166_v59 = vadd.f32 %v499_v57, %v1019_v17 }
  0xb5   : > { %v364_v60 = vpop.f32.mrf.mxu0  ;;  %v388_v61 = vpop.f32.mrf.mxu1 }
  0xb6   : > { %555 = vst [vmem:[%s1160_s26] sm:$0xff] %v1163_v58  ;;  %v365_v62 = vadd.f32 %v1147_v48, %v364_v60  ;;  %v389_v63 = vadd.f32 %v1147_v48, %v388_v61  ;;  %v409_v0 = vpop.f32.mrf.mxu2  ;;  %v433_v16 = vpop.f32.mrf.mxu3 }
  0xb7   : > { %563 = vst [vmem:[%s1160_s26 + $0x40] sm:$0xff] %v1166_v59  ;;  %v410_v1 = vadd.f32 %v1147_v48, %v409_v0 }
  0xb8   : > { %v458_v2 = vmax.f32 %v365_v62, 0.0  ;;  %v466_v3 = vmax.f32 %v389_v63, 0.0 }
  0xb9   : > { %v473_v4 = vmax.f32 %v410_v1, 0.0 }
  0xba   : > { %v492_v5 = vmul.f32 %v1151_v53, %v458_v2  ;;  %v500_v6 = vmul.f32 %v1151_v53, %v466_v3 }
  0xbb   : > { %v507_v7 = vmul.f32 %v1151_v53, %v473_v4 }
  0xbc   : > { %v1179_v8 = vadd.f32 %v492_v5, %v1028_v19  ;;  %v1182_v9 = vadd.f32 %v500_v6, %v1031_v20  ;;  %v434_v19 = vadd.f32 %v1147_v48, %v433_v16 }
  0xbd   : > { %v367_v10 = vpop.f32.mrf.mxu0  ;;  %v391_v11 = vpop.f32.mrf.mxu1  ;;  %v1185_v12 = vadd.f32 %v507_v7, %v1022_v18 }
  0xbe   : > { %556 = vst [vmem:[%s1160_s26 + $0x8] sm:$0xff] %v1179_v8  ;;  %v368_v13 = vadd.f32 %v1147_v48, %v367_v10  ;;  %v392_v14 = vadd.f32 %v1147_v48, %v391_v11  ;;  %v412_v15 = vpop.f32.mrf.mxu2  ;;  %v481_v50 = vmax.f32 %v434_v19, 0.0  ;;  %v436_v2 = vpop.f32.mrf.mxu3 }
  0xbf   : > { %564 = vst [vmem:[%s1160_s26 + $0x48] sm:$0xff] %v1182_v9  ;;  %v413_v17 = vadd.f32 %v1147_v48, %v412_v15  ;;  %v437_v3 = vadd.f32 %v1147_v48, %v436_v2 }
  0xc0   : > { %v459_v20 = vmax.f32 %v368_v13, 0.0  ;;  %v467_v49 = vmax.f32 %v392_v14, 0.0  ;;  %571 = vst [vmem:[%s1160_s26 + $0x80] sm:$0xff] %v1185_v12  ;;  %v515_v55 = vmul.f32 %v1151_v53, %v481_v50 }
  0xc1   : > { %v474_v18 = vmax.f32 %v413_v17, 0.0  ;;  %v482_v5 = vmax.f32 %v437_v3, 0.0 }
  0xc2   : > { %v493_v51 = vmul.f32 %v1151_v53, %v459_v20  ;;  %v501_v52 = vmul.f32 %v1151_v53, %v467_v49  ;;  %v1211_v63 = vadd.f32 %v515_v55, %v1039_v22 }
  0xc3   : > { %v508_v54 = vmul.f32 %v1151_v53, %v474_v18  ;;  %v516_v11 = vmul.f32 %v1151_v53, %v482_v5 }
  0xc4   : > { %v1202_v56 = vadd.f32 %v493_v51, %v1044_v23  ;;  %v1205_v57 = vadd.f32 %v501_v52, %v1047_v24  ;;  %579 = vst [vmem:[%s1160_s26 + $0xc0] sm:$0xff] %v1211_v63 }
  0xc5   : > { %v370_v60 = vpop.f32.mrf.mxu0  ;;  %v394_v61 = vpop.f32.mrf.mxu1  ;;  %v1208_v62 = vadd.f32 %v508_v54, %v1034_v21  ;;  %v1239_v19 = vadd.f32 %v516_v11, %v1055_v26 }
  0xc6   : > { %557 = vst [vmem:[%s1160_s26 + $0x10] sm:$0xff] %v1202_v56  ;;  %v371_v0 = vadd.f32 %v1147_v48, %v370_v60  ;;  %v395_v23 = vadd.f32 %v1147_v48, %v394_v61  ;;  %v415_v1 = vpop.f32.mrf.mxu2  ;;  %v439_v18 = vpop.f32.mrf.mxu3 }
  0xc7   : > { %565 = vst [vmem:[%s1160_s26 + $0x50] sm:$0xff] %v1205_v57  ;;  %v416_v24 = vadd.f32 %v1147_v48, %v415_v1  ;;  %v440_v50 = vadd.f32 %v1147_v48, %v439_v18 }
  0xc8   : > { %v460_v4 = vmax.f32 %v371_v0, 0.0  ;;  %v468_v21 = vmax.f32 %v395_v23, 0.0  ;;  %572 = vst [vmem:[%s1160_s26 + $0x88] sm:$0xff] %v1208_v62 }
  0xc9   : > { %v475_v22 = vmax.f32 %v416_v24, 0.0  ;;  %580 = vst [vmem:[%s1160_s26 + $0xc8] sm:$0xff] %v1239_v19  ;;  %v483_v52 = vmax.f32 %v440_v50, 0.0 }
  0xca   : > { %v494_v6 = vmul.f32 %v1151_v53, %v460_v4  ;;  %v502_v7 = vmul.f32 %v1151_v53, %v468_v21 }
  0xcb   : > { %v509_v10 = vmul.f32 %v1151_v53, %v475_v22  ;;  %v517_v61 = vmul.f32 %v1151_v53, %v483_v52 }
  0xcc   : > { %v1230_v13 = vadd.f32 %v494_v6, %v1060_v27  ;;  %v1233_v14 = vadd.f32 %v502_v7, %v1063_v28 }
  0xcd   : > { %v373_v15 = vpop.f32.mrf.mxu0  ;;  %v397_v16 = vpop.f32.mrf.mxu1  ;;  %v1236_v17 = vadd.f32 %v509_v10, %v1050_v25  ;;  %v1267_v3 = vadd.f32 %v517_v61, %v1071_v30 }
  0xce   : > { %558 = vst [vmem:[%s1160_s26 + $0x18] sm:$0xff] %v1230_v13  ;;  %v374_v20 = vadd.f32 %v1147_v48, %v373_v15  ;;  %v398_v27 = vadd.f32 %v1147_v48, %v397_v16  ;;  %v418_v49 = vpop.f32.mrf.mxu2  ;;  %v442_v22 = vpop.f32.mrf.mxu3 }
  0xcf   : > { %566 = vst [vmem:[%s1160_s26 + $0x58] sm:$0xff] %v1233_v14  ;;  %v419_v28 = vadd.f32 %v1147_v48, %v418_v49  ;;  %v443_v5 = vadd.f32 %v1147_v48, %v442_v22 }
  0xd0   : > { %v461_v51 = vmax.f32 %v374_v20, 0.0  ;;  %v469_v25 = vmax.f32 %v398_v27, 0.0  ;;  %573 = vst [vmem:[%s1160_s26 + $0x90] sm:$0xff] %v1236_v17 }
  0xd1   : > { %v476_v26 = vmax.f32 %v419_v28, 0.0  ;;  %581 = vst [vmem:[%s1160_s26 + $0xd0] sm:$0xff] %v1267_v3  ;;  %v484_v7 = vmax.f32 %v443_v5, 0.0 }
  0xd2   : > { %v495_v54 = vmul.f32 %v1151_v53, %v461_v51  ;;  %v503_v55 = vmul.f32 %v1151_v53, %v469_v25 }
  0xd3   : > { %v510_v60 = vmul.f32 %v1151_v53, %v476_v26  ;;  %v518_v16 = vmul.f32 %v1151_v53, %v484_v7 }
  0xd4   : > { %v1258_v0 = vadd.f32 %v495_v54, %v1076_v31  ;;  %v1261_v23 = vadd.f32 %v503_v55, %v1079_v32 }
  0xd5   : > { %v376_v1 = vpop.f32.mrf.mxu0  ;;  %v400_v2 = vpop.f32.mrf.mxu1  ;;  %v1264_v24 = vadd.f32 %v510_v60, %v1066_v29  ;;  %v1293_v50 = vadd.f32 %v518_v16, %v1082_v33  ;;  %v588_v60 = vadd.f32 %v1179_v8, %v1163_v58 }
  0xd6   : > { %559 = vst [vmem:[%s1160_s26 + $0x20] sm:$0xff] %v1258_v0  ;;  %v377_v4 = vadd.f32 %v1147_v48, %v376_v1  ;;  %v401_v31 = vadd.f32 %v1147_v48, %v400_v2  ;;  %v421_v21 = vpop.f32.mrf.mxu2 }
  0xd7   : > { %567 = vst [vmem:[%s1160_s26 + $0x60] sm:$0xff] %v1261_v23  ;;  %v422_v32 = vadd.f32 %v1147_v48, %v421_v21 }
  0xd8   : > { %v462_v6 = vmax.f32 %v377_v4, 0.0  ;;  %v470_v29 = vmax.f32 %v401_v31, 0.0  ;;  %574 = vst [vmem:[%s1160_s26 + $0x98] sm:$0xff] %v1264_v24  ;;  %v589_v31 = vadd.f32 %v588_v60, %v1202_v56 }
  0xd9   : > { %v477_v30 = vmax.f32 %v422_v32, 0.0  ;;  %582 = vst [vmem:[%s1160_s26 + $0xd8] sm:$0xff] %v1293_v50 }
  0xda   : > { %v496_v10 = vmul.f32 %v1151_v53, %v462_v6  ;;  %v504_v11 = vmul.f32 %v1151_v53, %v470_v29  ;;  %v590_v6 = vadd.f32 %v589_v31, %v1230_v13 }
  0xdb   : > { %v511_v15 = vmul.f32 %v1151_v53, %v477_v30 }
  0xdc   : > { %v528_v20 = vadd.f32 %v496_v10, %v1092_v35  ;;  %v1287_v27 = vadd.f32 %v504_v11, %v1095_v36  ;;  %v445_v35 = vpop.f32.mrf.mxu3 }
  0xdd   : > { %v379_v49 = vpop.f32.mrf.mxu0  ;;  %v403_v18 = vpop.f32.mrf.mxu1  ;;  %v1290_v28 = vadd.f32 %v511_v15, %v1085_v34  ;;  %v446_v52 = vadd.f32 %v1147_v48, %v445_v35 }
  0xde   : > { %560 = vst [vmem:[%s1160_s26 + $0x28] sm:$0xff] %v528_v20  ;;  %v380_v51 = vadd.f32 %v1147_v48, %v379_v49  ;;  %v404_v25 = vadd.f32 %v1147_v48, %v403_v18  ;;  %v424_v26 = vpop.f32.mrf.mxu2 }
  0xdf   : > { %568 = vst [vmem:[%s1160_s26 + $0x68] sm:$0xff] %v1287_v27  ;;  %v425_v36 = vadd.f32 %v1147_v48, %v424_v26  ;;  %v485_v33 = vmax.f32 %v446_v52, 0.0 }
  0xe0   : > { %v463_v54 = vmax.f32 %v380_v51, 0.0  ;;  %v471_v55 = vmax.f32 %v404_v25, 0.0  ;;  %575 = vst [vmem:[%s1160_s26 + $0xa0] sm:$0xff] %v1290_v28 }
  0xe1   : > { %v478_v34 = vmax.f32 %v425_v36, 0.0  ;;  %v519_v4 = vmul.f32 %v1151_v53, %v485_v33 }
  0xe2   : > { %v497_v61 = vmul.f32 %v1151_v53, %v463_v54  ;;  %v505_v1 = vmul.f32 %v1151_v53, %v471_v55 }
  0xe3   : > { %v512_v2 = vmul.f32 %v1151_v53, %v478_v34  ;;  %v1319_v8 = vadd.f32 %v519_v4, %v1098_v37 }
  0xe4   : > { %v529_v21 = vadd.f32 %v497_v61, %v1108_v39  ;;  %v537_v22 = vadd.f32 %v505_v1, %v1111_v40  ;;  %v448_v30 = vpop.f32.mrf.mxu3 }
  0xe5   : > { %v382_v32 = vpop.f32.mrf.mxu0  ;;  %v406_v5 = vpop.f32.mrf.mxu1  ;;  %v1316_v58 = vadd.f32 %v512_v2, %v1101_v38  ;;  %v449_v7 = vadd.f32 %v1147_v48, %v448_v30  ;;  %v591_v38 = vadd.f32 %v590_v6, %v1258_v0  ;;  %583 = vst [vmem:[%s1160_s26 + $0xe0] sm:$0xff] %v1319_v8  ;;  %v900_v6 = vmov 0.0  }
  0xe6   : > { %561 = vst [vmem:[%s1160_s26 + $0x30] sm:$0xff] %v529_v21  ;;  %v383_v29 = vadd.f32 %v1147_v48, %v382_v32  ;;  %v407_v56 = vadd.f32 %v1147_v48, %v406_v5  ;;  %v427_v39 = vpop.f32.mrf.mxu2 }
  0xe7   : > { %569 = vst [vmem:[%s1160_s26 + $0x70] sm:$0xff] %v537_v22  ;;  %v428_v40 = vadd.f32 %v1147_v48, %v427_v39  ;;  %v486_v11 = vmax.f32 %v449_v7, 0.0  ;;  %v592_v15 = vadd.f32 %v591_v38, %v528_v20 }
  0xe8   : > { %v464_v10 = vmax.f32 %v383_v29, 0.0  ;;  %v472_v37 = vmax.f32 %v407_v56, 0.0  ;;  %576 = vst [vmem:[%s1160_s26 + $0xa8] sm:$0xff] %v1316_v58 }
  0xe9   : > { %v479_v13 = vmax.f32 %v428_v40, 0.0  ;;  %v520_v0 = vmul.f32 %v1151_v53, %v486_v11  ;;  %v593_v51 = vadd.f32 %v592_v15, %v529_v21  ;;  %291 = vst [vmem:[#allocation2] sm:$0x1] %v900_v6 }
  0xea   : > { %v498_v16 = vmul.f32 %v1151_v53, %v464_v10  ;;  %v506_v49 = vmul.f32 %v1151_v53, %v472_v37 }
  0xeb   : > { %v513_v18 = vmul.f32 %v1151_v53, %v479_v13  ;;  %v552_v36 = vadd.f32 %v520_v0, %v1114_v41 }
  0xec   : > { %v530_v25 = vadd.f32 %v498_v16, %v1124_v43  ;;  %v538_v26 = vadd.f32 %v506_v49, %v1127_v44  ;;  %v451_v54 = vpop.f32.mrf.mxu3 }
  0xed   : > { %v545_v35 = vadd.f32 %v513_v18, %v1117_v42  ;;  %v452_v34 = vadd.f32 %v1147_v48, %v451_v54  ;;  %584 = vst [vmem:[%s1160_s26 + $0xe8] sm:$0xff] %v552_v36 }
  0xee   : > { %562 = vst [vmem:[%s1160_s26 + $0x38] sm:$0xff] %v530_v25  ;;  %v594_v20 = vadd.f32 %v593_v51, %v530_v25  ;;  %v430_v52 = vpop.f32.mrf.mxu2 }
  0xef   : > { %570 = vst [vmem:[%s1160_s26 + $0x78] sm:$0xff] %v538_v26  ;;  %v431_v55 = vadd.f32 %v1147_v48, %v430_v52  ;;  %v487_v44 = vmax.f32 %v452_v34, 0.0 }
  0xf0   : > { %v595_v33 = vadd.f32 %v594_v20, %v1166_v59  ;;  %577 = vst [vmem:[%s1160_s26 + $0xb0] sm:$0xff] %v545_v35  ;;  %v587_v37 = vld [vmem:[#allocation2] sm:$0x1] }
  0xf1   : > { %v480_v43 = vmax.f32 %v431_v55, 0.0  ;;  %v521_v60 = vmul.f32 %v1151_v53, %v487_v44 }
  0xf2   : > { %v596_v42 = vadd.f32 %v595_v33, %v1182_v9 }
  0xf3   : > { %v514_v41 = vmul.f32 %v1151_v53, %v480_v43  ;;  %v553_v2 = vadd.f32 %v521_v60, %v1130_v45 }
  0xf4   : > { %v597_v61 = vadd.f32 %v596_v42, %v1205_v57  ;;  %v454_v4 = vpop.f32.mrf.mxu3 }
  0xf5   : > { %v546_v1 = vadd.f32 %v514_v41, %v1133_v46  ;;  %v455_v31 = vadd.f32 %v1147_v48, %v454_v4  ;;  %585 = vst [vmem:[%s1160_s26 + $0xf0] sm:$0xff] %v553_v2 }
  0xf6   : > { %v598_v59 = vadd.f32 %v597_v61, %v1233_v14 }
  0xf7   : > { %578 = vst [vmem:[%s1160_s26 + $0xb8] sm:$0xff] %v546_v1  ;;  %v488_v9 = vmax.f32 %v455_v31, 0.0 }
  0xf8   : > { %v599_v21 = vadd.f32 %v598_v59, %v1261_v23 }
  0xf9   : > { %v522_v5 = vmul.f32 %v1151_v53, %v488_v9 }
  0xfa   : > { %v600_v32 = vadd.f32 %v599_v21, %v1287_v27 }
  0xfb   : > { %v554_v46 = vadd.f32 %v522_v5, %v1140_v47 }
  0xfc   : > { %v601_v57 = vadd.f32 %v600_v32, %v537_v22 }
  0xfd   : > { %586 = vst [vmem:[%s1160_s26 + $0xf8] sm:$0xff] %v554_v46 }
  0xfe   : > { %v602_v45 = vadd.f32 %v601_v57, %v538_v26 }
 0x100   : > { %v603_v14 = vadd.f32 %v602_v45, %v1185_v12 }
 0x102   : > { %v604_v29 = vadd.f32 %v603_v14, %v1208_v62 }
 0x104   : > { %v605_v48 = vadd.f32 %v604_v29, %v1236_v17 }
 0x106   : > { %v606_v23 = vadd.f32 %v605_v48, %v1264_v24 }
 0x108   : > { %v607_v56 = vadd.f32 %v606_v23, %v1290_v28 }
 0x10a   : > { %v608_v27 = vadd.f32 %v607_v56, %v1316_v58 }
 0x10c   : > { %v609_v53 = vadd.f32 %v608_v27, %v545_v35 }
 0x10e   : > { %v610_v22 = vadd.f32 %v609_v53, %v546_v1 }
 0x110   : > { %v611_v39 = vadd.f32 %v610_v22, %v1211_v63 }
 0x112   : > { %v612_v47 = vadd.f32 %v611_v39, %v1239_v19 }
 0x114   : > { %v613_v30 = vadd.f32 %v612_v47, %v1267_v3 }
 0x116   : > { %v614_v12 = vadd.f32 %v613_v30, %v1293_v50 }
 0x118   : > { %v615_v62 = vadd.f32 %v614_v12, %v1319_v8 }
 0x11a   : > { %v616_v17 = vadd.f32 %v615_v62, %v552_v36 }
 0x11c   : > { %v617_v40 = vadd.f32 %v616_v17, %v553_v2 }
 0x11e   : > { %v618_v24 = vadd.f32 %v617_v40, %v554_v46 }
 0x120   : > { %v619_v7 = vrot.slane %v618_v24, 4 }
 0x122   : > { %v620_v28 = vadd.f32 %v619_v7, %v618_v24 }
 0x124   : > { %v621_v38 = vrot.slane %v620_v28, 2 }
 0x126   : > { %v622_v58 = vadd.f32 %v621_v38, %v620_v28 }
 0x128   : > { %v623_v10 = vrot.slane %v622_v58, 1 }
 0x12a   : > { %v624_v13 = vadd.f32 %v623_v10, %v622_v58 }
 0x12c   : > { %v625_v63 = vadd.f32 %v624_v13, %v587_v37 }
 0x12e   : > { %626 = vst [vmem:[#allocation2] sm:$0x1] %v625_v63 }
 0x135   : > { %v630_v19 = vld [vmem:[#allocation2] sm:$0x1] }
 0x136   : > { %631 = vst [vmem:[%s286_s30] sm:$0x1] %v630_v19 }
 0x137 PF: > { %s17_s20 = sadd.s32 1, %s897_s20   ;;  %s1393_s18 = smov %s893_s19 }
 0x138   : > { %p14_p8 = scmp.ge.s32.totalorder %s17_s20, 4   ;;  %s1394_s19 = smov %s1396_s22 }
 0x13a   :  { %16 = sbr.rel (!%p14_p8) target bundleno = 2 (0x2), region = 91 }
 0x13f   :  { %674 = vsyncpa [#allocation4], 1 }
 0x140   :  { %676 = vsyncpa [#allocation4 + $0x1], 1 }

// kernel: _lambda_.5
= control target key start
LH: loop header
LB: loop body
LE: loop exit
PB: predicated region body
PF: predicated region fallthrough
CT: control target
= control target key end

     0   :  { %11 = vsyncpa [#allocation5], 0  ;;  %s1553_s0 = inlined_call_operand.vmem [shape: f32[2], index: 0, kind: input, shape index: {}]   ;;  %s1554_s1 = inlined_call_operand.vmem [shape: f32[2,256,128], index: 1, kind: input, shape index: {}]   ;;  %s1555_s2 = inlined_call_operand.vmem [shape: f32[128,128], index: 2, kind: input, shape index: {}]   ;;  %s1556_s3 = inlined_call_operand.vmem [shape: f32[1,128], index: 3, kind: input, shape index: {}]   ;;  %s1557_s4 = inlined_call_operand.vmem [shape: f32[2,256,128], index: 4, kind: output, shape index: {0}]   ;;  %s1558_s5 = inlined_call_operand.hbm [shape: f32[2,1,128], index: 5, kind: output, shape index: {1}]  }
   0x1   :  { %12 = vsyncpa [#allocation4], 0 }
   0x2   :  { %14 = vsyncpa [#allocation4 + $0x1], 0  ;;  %s1039_s18 = smov 0   ;;  %s1041_s19 = smov 0  }
   0x3   :  { %s1043_s20 = smov 0   ;;  %s1045_s21 = smov 0  }
   0x4   :  { %s1047_s22 = smov 0   ;;  %s1049_s23 = smov 0  }
   0x5 LB: > { %s777_s24 = sadd.s32 4294967295, %s1005_s23   ;;  %s778_s25 = sadd.s32 4294967294, %s1005_s23   ;;  %s1005_s23 = sphi %s1049_s23, %s20_s23   ;;  %s1001_s22 = sphi %s1047_s22, %s1565_s22   ;;  %s997_s21 = sphi %s1045_s21, %s1564_s21   ;;  %s993_s20 = sphi %s1043_s20, %s1563_s20   ;;  %s989_s19 = sphi %s1041_s19, %s1562_s19   ;;  %s985_s18 = sphi %s1039_s18, %s1561_s18  }
   0x6   : > { %s32_s26 = sadd.s32 1, %s1001_s22  ;;  %s158_s27 = sadd.s32 1, %s993_s20 }
   0x7   : > { %p34_p0 = scmp.ge.s32.totalorder %s32_s26, 2  ;;  %p168_p1 = scmp.ne.s32.totalorder %s993_s20, %s989_s19 }
   0x8   : > { %p169_p2 = scmp.eq.s32.totalorder %s777_s24, 1  ;;  %p174_p3 = scmp.ne.s32.totalorder %s989_s19, %s985_s18 }
   0x9   : > { %s1567_s26 = smov (%p34_p0, %s32_s26), 0  ;;  %p175_p5 = scmp.eq.s32.totalorder %s778_s25, 1 }
   0xa   : > { %p1079_p4 = por %p169_p2, %p168_p1  ;;  %s155_s29 = ssub.s32 %s1001_s22, %s1567_s26 }
   0xb   : > { %p779_p6 = scmp.ge.s32.totalorder %s1005_s23, 1  ;;  %p156_p7 = scmp.eq.s32.totalorder %s155_s29, 0 }
   0xc   : > { %p1086_p8 = por %p175_p5, %p174_p3  ;;  %p182_p9 = scmp.lt.s32.totalorder %s1005_s23, 3 }
   0xd   : > { %s1092_s6 = scalar_select %p156_p7, %s993_s20, %s158_s27  }
   0xe   : > { %p183_p10 = pnand %p779_p6, %p182_p9  ;;  %p854_p11 = scmp.eq.s32.totalorder %s777_s24, 0 }
   0xf   : > { %s194_s9 = sshll.u32 %s1553_s0, 4  ;;  %s1007_s10 = smov [#allocation3]   ;;  %s195_s9 = int_to_ptr.vmem [resolvable:$true] %s194_s9 }
  0x10   : > { %p846_p12 = pneg %p183_p10  ;;  %226 = sbr.rel (%p183_p10) target bundleno = 321 (0x141), region = 36 }
  0x12   : > { %p847_p13 = pnand %p854_p11, %p846_p12 }
  0x14   : > { %849 = dma.vmem_to_smem (!%p847_p13), %s195_s9, 16, %s1007_s10, [#allocation5]  }
  0x15   : > { %976 = dma.done.wait (%p854_p11), [#allocation5], 16  }
  0x16   : > { %978 = vsyncadd (%p854_p11), [#allocation5], 4294967280 }
  0x17   : > { %233 = sfence }
  0x18   : > { %v340_v0 = vld [vmem:[%s1555_s2 + $0x78] sm:$0xff]  ;;  %v339_v1 = vld [vmem:[%s1555_s2 + $0x70] sm:$0xff]  ;;  %v338_v2 = vld [vmem:[%s1555_s2 + $0x68] sm:$0xff]  ;;  %p269_p0 = scmp.lt.s32.totalorder %s997_s21, 1  ;;  %s490_s25 = sld [smem:[#allocation3 + %s997_s21]] }
  0x19   : > { %345 = vmatpush.msra.mxu0 %v340_v0  ;;  %792 = vmatpush.msra.mxu1 %v340_v0  ;;  %v337_v3 = vld [vmem:[%s1555_s2 + $0x60] sm:$0xff]  ;;  %v336_v4 = vld [vmem:[%s1555_s2 + $0x58] sm:$0xff]  ;;  %v335_v5 = vld [vmem:[%s1555_s2 + $0x50] sm:$0xff]  ;;  %s655_s12 = scalar_lea.hbm %s1558_s5, %s997_s21  ;;  %s943_s7 = scalar_lea.hbm %s1558_s5, 2 }
  0x1a   : > { %793 = vmatpush.msra.mxu2 %v340_v0  ;;  %794 = vmatpush.msra.mxu3 %v340_v0  ;;  %v334_v6 = vld [vmem:[%s1555_s2 + $0x48] sm:$0xff]  ;;  %v333_v7 = vld [vmem:[%s1555_s2 + $0x40] sm:$0xff]  ;;  %v332_v8 = vld [vmem:[%s1555_s2 + $0x38] sm:$0xff]  ;;  %s1132_s24 = scalar_select %p269_p0, %s997_s21, 1 }
  0x1b   : > { %346 = vmatpush.msra.mxu0 %v339_v1  ;;  %795 = vmatpush.msra.mxu1 %v339_v1  ;;  %v331_v9 = vld [vmem:[%s1555_s2 + $0x30] sm:$0xff]  ;;  %v330_v10 = vld [vmem:[%s1555_s2 + $0x28] sm:$0xff]  ;;  %v329_v11 = vld [vmem:[%s1555_s2 + $0x20] sm:$0xff] }
  0x1c   : > { %796 = vmatpush.msra.mxu2 %v339_v1  ;;  %797 = vmatpush.msra.mxu3 %v339_v1  ;;  %v328_v12 = vld [vmem:[%s1555_s2 + $0x18] sm:$0xff]  ;;  %s790_s8 = sshll.u32 %s1132_s24, 8  ;;  %v327_v13 = vld [vmem:[%s1555_s2 + $0x10] sm:$0xff]  ;;  %v326_v14 = vld [vmem:[%s1555_s2 + $0x8] sm:$0xff]  ;;  %s266_s24 = sand.u32 1, %s989_s19  }
  0x1d   : > { %347 = vmatpush.msra.mxu0 %v338_v2  ;;  %798 = vmatpush.msra.mxu1 %v338_v2  ;;  %s1152_s15 = scalar_lea.vmem %s1554_s1, %s790_s8  ;;  %v325_v15 = vld [vmem:[%s1555_s2] sm:$0xff]  ;;  %s1302_s10 = scalar_lea.vmem %s1557_s4, %s790_s8 }
  0x1e   : > { %799 = vmatpush.msra.mxu2 %v338_v2  ;;  %800 = vmatpush.msra.mxu3 %v338_v2  ;;  %v1158_v16 = vld [vmem:[%s1152_s15] sm:$0xff]  ;;  %v1170_v19 = vld [vmem:[%s1152_s15 + $0x8] sm:$0xff]  ;;  %v1186_v23 = vld [vmem:[%s1152_s15 + $0x10] sm:$0xff]  ;;  %v1293_v53 = vstv %s490_s25  ;;  %s267_s13 = scalar_lea.vmem [#allocation6], %s266_s24  ;;  %s643_s16 = scalar_lea.sflag [#allocation4], %s266_s24 }
  0x1f   : > { %348 = vmatpush.msra.mxu0 %v337_v3  ;;  %801 = vmatpush.msra.mxu1 %v337_v3  ;;  %v1161_v17 = vld [vmem:[%s1152_s15 + $0x40] sm:$0xff]  ;;  %v1173_v20 = vld [vmem:[%s1152_s15 + $0x48] sm:$0xff]  ;;  %v1189_v24 = vld [vmem:[%s1152_s15 + $0x50] sm:$0xff]  ;;  %s657_s14 = sshll.u32 %s267_s13, 4  ;;  %s658_s14 = int_to_ptr.vmem [resolvable:$true] %s657_s14 }
  0x20   : > { %802 = vmatpush.msra.mxu2 %v337_v3  ;;  %803 = vmatpush.msra.mxu3 %v337_v3  ;;  %v1164_v18 = vld [vmem:[%s1152_s15 + $0x80] sm:$0xff]  ;;  %v1176_v21 = vld [vmem:[%s1152_s15 + $0x88] sm:$0xff]  ;;  %v1192_v25 = vld [vmem:[%s1152_s15 + $0x90] sm:$0xff] }
  0x21   : > { %349 = vmatpush.msra.mxu0 %v336_v4  ;;  %804 = vmatpush.msra.mxu1 %v336_v4  ;;  %v1181_v22 = vld [vmem:[%s1152_s15 + $0xc0] sm:$0xff]  ;;  %v1197_v26 = vld [vmem:[%s1152_s15 + $0xc8] sm:$0xff]  ;;  %v1202_v27 = vld [vmem:[%s1152_s15 + $0x18] sm:$0xff] }
  0x22   : > { %805 = vmatpush.msra.mxu2 %v336_v4  ;;  %806 = vmatpush.msra.mxu3 %v336_v4  ;;  %v1205_v28 = vld [vmem:[%s1152_s15 + $0x58] sm:$0xff]  ;;  %v1213_v30 = vld [vmem:[%s1152_s15 + $0xd0] sm:$0xff]  ;;  %v1218_v31 = vld [vmem:[%s1152_s15 + $0x20] sm:$0xff] }
  0x23   : > { %350 = vmatpush.msra.mxu0 %v335_v5  ;;  %807 = vmatpush.msra.mxu1 %v335_v5  ;;  %v1208_v29 = vld [vmem:[%s1152_s15 + $0x98] sm:$0xff]  ;;  %v1221_v32 = vld [vmem:[%s1152_s15 + $0x60] sm:$0xff]  ;;  %v1234_v35 = vld [vmem:[%s1152_s15 + $0x28] sm:$0xff] }
  0x24   : > { %808 = vmatpush.msra.mxu2 %v335_v5  ;;  %809 = vmatpush.msra.mxu3 %v335_v5  ;;  %v1224_v33 = vld [vmem:[%s1152_s15 + $0xd8] sm:$0xff]  ;;  %v1227_v34 = vld [vmem:[%s1152_s15 + $0xa0] sm:$0xff]  ;;  %v1237_v36 = vld [vmem:[%s1152_s15 + $0x68] sm:$0xff] }
  0x25   : > { %351 = vmatpush.msra.mxu0 %v334_v6  ;;  %810 = vmatpush.msra.mxu1 %v334_v6  ;;  %v1240_v37 = vld [vmem:[%s1152_s15 + $0xe0] sm:$0xff]  ;;  %v1243_v38 = vld [vmem:[%s1152_s15 + $0xa8] sm:$0xff]  ;;  %v1250_v39 = vld [vmem:[%s1152_s15 + $0x30] sm:$0xff] }
  0x26   : > { %811 = vmatpush.msra.mxu2 %v334_v6  ;;  %812 = vmatpush.msra.mxu3 %v334_v6  ;;  %v1253_v40 = vld [vmem:[%s1152_s15 + $0x70] sm:$0xff]  ;;  %v1256_v41 = vld [vmem:[%s1152_s15 + $0xe8] sm:$0xff]  ;;  %v1266_v43 = vld [vmem:[%s1152_s15 + $0x38] sm:$0xff] }
  0x27   : > { %352 = vmatpush.msra.mxu0 %v333_v7  ;;  %813 = vmatpush.msra.mxu1 %v333_v7  ;;  %v1259_v42 = vld [vmem:[%s1152_s15 + $0xb0] sm:$0xff]  ;;  %v1269_v44 = vld [vmem:[%s1152_s15 + $0x78] sm:$0xff]  ;;  %v1289_v48 = vld [vmem:[%s1556_s3] ss:$0 sm:$0xff] }
  0x28   : > { %814 = vmatpush.msra.mxu2 %v333_v7  ;;  %815 = vmatpush.msra.mxu3 %v333_v7  ;;  %v1272_v45 = vld [vmem:[%s1152_s15 + $0xf0] sm:$0xff]  ;;  %v1275_v46 = vld [vmem:[%s1152_s15 + $0xb8] sm:$0xff] }
  0x29   : > { %353 = vmatpush.msra.mxu0 %v332_v8  ;;  %816 = vmatpush.msra.mxu1 %v332_v8  ;;  %v1282_v47 = vld [vmem:[%s1152_s15 + $0xf8] sm:$0xff]  ;;  %s659_s15 = sshll.u32 %s655_s12, 4  ;;  %s660_s15 = int_to_ptr.hbm [resolvable:$true] %s659_s15 }
  0x2a   : > { %817 = vmatpush.msra.mxu2 %v332_v8  ;;  %818 = vmatpush.msra.mxu3 %v332_v8  ;;  %s937_s17 = sshra.s32 %s660_s15, 4  ;;  %s938_s17 = int_to_ptr.hbm [resolvable:$true] %s937_s17 }
  0x2b   : > { %354 = vmatpush.msra.mxu0 %v331_v9  ;;  %819 = vmatpush.msra.mxu1 %v331_v9  ;;  %s939_s25 = scalar_lea.hbm %s938_s17, 1  ;;  %p944_p5 = scmp.lt.s32.totalorder %s938_s17, %s1558_s5 }
  0x2c   : > { %820 = vmatpush.msra.mxu2 %v331_v9  ;;  %821 = vmatpush.msra.mxu3 %v331_v9  ;;  %p940_p1 = scmp.ne.s32.totalorder %s938_s17, %s939_s25  ;;  %p945_p6 = scmp.lt.s32.totalorder %s943_s7, %s939_s25 }
  0x2d   : > { %355 = vmatpush.msra.mxu0 %v330_v10  ;;  %822 = vmatpush.msra.mxu1 %v330_v10 }
  0x2e   : > { %823 = vmatpush.msra.mxu2 %v330_v10  ;;  %824 = vmatpush.msra.mxu3 %v330_v10  ;;  %p941_p2 = pnand %p940_p1, %p1079_p4  ;;  %p946_p7 = por %p945_p6, %p944_p5 }
  0x2f   : > { %356 = vmatpush.msra.mxu0 %v329_v11  ;;  %825 = vmatpush.msra.mxu1 %v329_v11 }
  0x30   : > { %826 = vmatpush.msra.mxu2 %v329_v11  ;;  %827 = vmatpush.msra.mxu3 %v329_v11  ;;  %p942_p3 = pneg %p941_p2 }
  0x31   : > { %357 = vmatpush.msra.mxu0 %v328_v12  ;;  %828 = vmatpush.msra.mxu1 %v328_v12 }
  0x32   : > { %829 = vmatpush.msra.mxu2 %v328_v12  ;;  %830 = vmatpush.msra.mxu3 %v328_v12  ;;  %p947_p9 = pnand %p946_p7, %p942_p3 }
  0x33   : > { %358 = vmatpush.msra.mxu0 %v327_v13  ;;  %831 = vmatpush.msra.mxu1 %v327_v13 }
  0x34   : > { %832 = vmatpush.msra.mxu2 %v327_v13  ;;  %833 = vmatpush.msra.mxu3 %v327_v13 }
  0x35   : > { %359 = vmatpush.msra.mxu0 %v326_v14  ;;  %834 = vmatpush.msra.mxu1 %v326_v14 }
  0x36   : > { %835 = vmatpush.msra.mxu2 %v326_v14  ;;  %836 = vmatpush.msra.mxu3 %v326_v14 }
  0x37   : > { %360 = vmatpush.msra.mxu0 %v325_v15  ;;  %837 = vmatpush.msra.mxu1 %v325_v15 }
  0x38   : > { %361 = vmatmul.f32.vlgmr.msra.gmra.mxu0 %v1158_v16  ;;  %385 = vmatmul.f32.vlgmr.msra.gmra.mxu1 %v1161_v17 }
  0x39   : > { %838 = vmatpush.msra.mxu2 %v325_v15  ;;  %839 = vmatpush.msra.mxu3 %v325_v15 }
  0x3a   : > { %409 = vmatmul.f32.vlgmr.msra.gmra.mxu2 %v1164_v18  ;;  %433 = vmatmul.f32.vlgmr.msra.gmra.mxu3 %v1181_v22 }
  0x40   : > { %364 = vmatmul.f32.gmra.mxu0 %v1170_v19  ;;  %388 = vmatmul.f32.gmra.mxu1 %v1173_v20 }
  0x42   : > { %412 = vmatmul.f32.gmra.mxu2 %v1176_v21  ;;  %436 = vmatmul.f32.gmra.mxu3 %v1197_v26 }
  0x48   : > { %367 = vmatmul.f32.gmra.mxu0 %v1186_v23  ;;  %391 = vmatmul.f32.gmra.mxu1 %v1189_v24 }
  0x4a   : > { %415 = vmatmul.f32.gmra.mxu2 %v1192_v25  ;;  %439 = vmatmul.f32.gmra.mxu3 %v1213_v30 }
  0x50   : > { %370 = vmatmul.f32.gmra.mxu0 %v1202_v27  ;;  %394 = vmatmul.f32.gmra.mxu1 %v1205_v28 }
  0x52   : > { %418 = vmatmul.f32.gmra.mxu2 %v1208_v29  ;;  %442 = vmatmul.f32.gmra.mxu3 %v1224_v33 }
  0x58   : > { %373 = vmatmul.f32.gmra.mxu0 %v1218_v31  ;;  %397 = vmatmul.f32.gmra.mxu1 %v1221_v32 }
  0x5a   : > { %421 = vmatmul.f32.gmra.mxu2 %v1227_v34  ;;  %445 = vmatmul.f32.gmra.mxu3 %v1240_v37 }
  0x60   : > { %376 = vmatmul.f32.gmra.mxu0 %v1234_v35  ;;  %400 = vmatmul.f32.gmra.mxu1 %v1237_v36 }
  0x62   : > { %424 = vmatmul.f32.gmra.mxu2 %v1243_v38  ;;  %448 = vmatmul.f32.gmra.mxu3 %v1256_v41 }
  0x68   : > { %379 = vmatmul.f32.gmra.mxu0 %v1250_v39  ;;  %403 = vmatmul.f32.gmra.mxu1 %v1253_v40 }
  0x6a   : > { %427 = vmatmul.f32.gmra.mxu2 %v1259_v42  ;;  %451 = vmatmul.f32.gmra.mxu3 %v1272_v45 }
  0x70   : > { %382 = vmatmul.f32.gmra.mxu0 %v1266_v43  ;;  %406 = vmatmul.f32.gmra.mxu1 %v1269_v44 }
  0x72   : > { %430 = vmatmul.f32.gmra.mxu2 %v1275_v46  ;;  %454 = vmatmul.f32.gmra.mxu3 %v1282_v47 }
  0xb5   : > { %v362_v49 = vpop.f32.mrf.mxu0  ;;  %v386_v50 = vpop.f32.mrf.mxu1 }
  0xb6   : > { %v363_v51 = vadd.f32 %v1289_v48, %v362_v49  ;;  %v387_v52 = vadd.f32 %v1289_v48, %v386_v50 }
  0xb8   : > { %v458_v54 = vmax.f32 %v363_v51, 0.0  ;;  %v466_v55 = vmax.f32 %v387_v52, 0.0 }
  0xba   : > { %v492_v56 = vmul.f32 %v1293_v53, %v458_v54  ;;  %v500_v57 = vmul.f32 %v1293_v53, %v466_v55 }
  0xbc   : > { %v1305_v58 = vadd.f32 %v492_v56, %v1158_v16  ;;  %v1308_v59 = vadd.f32 %v500_v57, %v1161_v17 }
  0xbd   : > { %v365_v60 = vpop.f32.mrf.mxu0  ;;  %v389_v61 = vpop.f32.mrf.mxu1 }
  0xbe   : > { %556 = vst [vmem:[%s1302_s10] sm:$0xff] %v1305_v58  ;;  %v366_v62 = vadd.f32 %v1289_v48, %v365_v60  ;;  %v390_v63 = vadd.f32 %v1289_v48, %v389_v61  ;;  %v410_v0 = vpop.f32.mrf.mxu2  ;;  %v434_v16 = vpop.f32.mrf.mxu3 }
  0xbf   : > { %564 = vst [vmem:[%s1302_s10 + $0x40] sm:$0xff] %v1308_v59  ;;  %v411_v1 = vadd.f32 %v1289_v48, %v410_v0 }
  0xc0   : > { %v459_v2 = vmax.f32 %v366_v62, 0.0  ;;  %v467_v3 = vmax.f32 %v390_v63, 0.0 }
  0xc1   : > { %v474_v4 = vmax.f32 %v411_v1, 0.0 }
  0xc2   : > { %v493_v5 = vmul.f32 %v1293_v53, %v459_v2  ;;  %v501_v6 = vmul.f32 %v1293_v53, %v467_v3 }
  0xc3   : > { %v508_v7 = vmul.f32 %v1293_v53, %v474_v4 }
  0xc4   : > { %v1321_v8 = vadd.f32 %v493_v5, %v1170_v19  ;;  %v1324_v9 = vadd.f32 %v501_v6, %v1173_v20  ;;  %v435_v19 = vadd.f32 %v1289_v48, %v434_v16 }
  0xc5   : > { %v368_v10 = vpop.f32.mrf.mxu0  ;;  %v392_v11 = vpop.f32.mrf.mxu1  ;;  %v1327_v12 = vadd.f32 %v508_v7, %v1164_v18 }
  0xc6   : > { %557 = vst [vmem:[%s1302_s10 + $0x8] sm:$0xff] %v1321_v8  ;;  %v369_v13 = vadd.f32 %v1289_v48, %v368_v10  ;;  %v393_v14 = vadd.f32 %v1289_v48, %v392_v11  ;;  %v413_v15 = vpop.f32.mrf.mxu2  ;;  %v482_v50 = vmax.f32 %v435_v19, 0.0  ;;  %v437_v2 = vpop.f32.mrf.mxu3 }
  0xc7   : > { %565 = vst [vmem:[%s1302_s10 + $0x48] sm:$0xff] %v1324_v9  ;;  %v414_v17 = vadd.f32 %v1289_v48, %v413_v15  ;;  %v438_v3 = vadd.f32 %v1289_v48, %v437_v2 }
  0xc8   : > { %v460_v20 = vmax.f32 %v369_v13, 0.0  ;;  %v468_v49 = vmax.f32 %v393_v14, 0.0  ;;  %572 = vst [vmem:[%s1302_s10 + $0x80] sm:$0xff] %v1327_v12  ;;  %v516_v55 = vmul.f32 %v1293_v53, %v482_v50 }
  0xc9   : > { %v475_v18 = vmax.f32 %v414_v17, 0.0  ;;  %v483_v5 = vmax.f32 %v438_v3, 0.0 }
  0xca   : > { %v494_v51 = vmul.f32 %v1293_v53, %v460_v20  ;;  %v502_v52 = vmul.f32 %v1293_v53, %v468_v49  ;;  %v1353_v63 = vadd.f32 %v516_v55, %v1181_v22 }
  0xcb   : > { %v509_v54 = vmul.f32 %v1293_v53, %v475_v18  ;;  %v517_v11 = vmul.f32 %v1293_v53, %v483_v5 }
  0xcc   : > { %v1344_v56 = vadd.f32 %v494_v51, %v1186_v23  ;;  %v1347_v57 = vadd.f32 %v502_v52, %v1189_v24  ;;  %580 = vst [vmem:[%s1302_s10 + $0xc0] sm:$0xff] %v1353_v63 }
  0xcd   : > { %v371_v60 = vpop.f32.mrf.mxu0  ;;  %v395_v61 = vpop.f32.mrf.mxu1  ;;  %v1350_v62 = vadd.f32 %v509_v54, %v1176_v21  ;;  %v1381_v19 = vadd.f32 %v517_v11, %v1197_v26 }
  0xce   : > { %558 = vst [vmem:[%s1302_s10 + $0x10] sm:$0xff] %v1344_v56  ;;  %v372_v0 = vadd.f32 %v1289_v48, %v371_v60  ;;  %v396_v23 = vadd.f32 %v1289_v48, %v395_v61  ;;  %v416_v1 = vpop.f32.mrf.mxu2  ;;  %v440_v18 = vpop.f32.mrf.mxu3 }
  0xcf   : > { %566 = vst [vmem:[%s1302_s10 + $0x50] sm:$0xff] %v1347_v57  ;;  %v417_v24 = vadd.f32 %v1289_v48, %v416_v1  ;;  %v441_v50 = vadd.f32 %v1289_v48, %v440_v18 }
  0xd0   : > { %v461_v4 = vmax.f32 %v372_v0, 0.0  ;;  %v469_v21 = vmax.f32 %v396_v23, 0.0  ;;  %573 = vst [vmem:[%s1302_s10 + $0x88] sm:$0xff] %v1350_v62 }
  0xd1   : > { %v476_v22 = vmax.f32 %v417_v24, 0.0  ;;  %581 = vst [vmem:[%s1302_s10 + $0xc8] sm:$0xff] %v1381_v19  ;;  %v484_v52 = vmax.f32 %v441_v50, 0.0 }
  0xd2   : > { %v495_v6 = vmul.f32 %v1293_v53, %v461_v4  ;;  %v503_v7 = vmul.f32 %v1293_v53, %v469_v21 }
  0xd3   : > { %v510_v10 = vmul.f32 %v1293_v53, %v476_v22  ;;  %v518_v61 = vmul.f32 %v1293_v53, %v484_v52 }
  0xd4   : > { %v1372_v13 = vadd.f32 %v495_v6, %v1202_v27  ;;  %v1375_v14 = vadd.f32 %v503_v7, %v1205_v28 }
  0xd5   : > { %v374_v15 = vpop.f32.mrf.mxu0  ;;  %v398_v16 = vpop.f32.mrf.mxu1  ;;  %v1378_v17 = vadd.f32 %v510_v10, %v1192_v25  ;;  %v1409_v3 = vadd.f32 %v518_v61, %v1213_v30 }
  0xd6   : > { %559 = vst [vmem:[%s1302_s10 + $0x18] sm:$0xff] %v1372_v13  ;;  %v375_v20 = vadd.f32 %v1289_v48, %v374_v15  ;;  %v399_v27 = vadd.f32 %v1289_v48, %v398_v16  ;;  %v419_v49 = vpop.f32.mrf.mxu2  ;;  %v443_v22 = vpop.f32.mrf.mxu3 }
  0xd7   : > { %567 = vst [vmem:[%s1302_s10 + $0x58] sm:$0xff] %v1375_v14  ;;  %v420_v28 = vadd.f32 %v1289_v48, %v419_v49  ;;  %v444_v5 = vadd.f32 %v1289_v48, %v443_v22 }
  0xd8   : > { %v462_v51 = vmax.f32 %v375_v20, 0.0  ;;  %v470_v25 = vmax.f32 %v399_v27, 0.0  ;;  %574 = vst [vmem:[%s1302_s10 + $0x90] sm:$0xff] %v1378_v17 }
  0xd9   : > { %v477_v26 = vmax.f32 %v420_v28, 0.0  ;;  %582 = vst [vmem:[%s1302_s10 + $0xd0] sm:$0xff] %v1409_v3  ;;  %v485_v7 = vmax.f32 %v444_v5, 0.0 }
  0xda   : > { %v496_v54 = vmul.f32 %v1293_v53, %v462_v51  ;;  %v504_v55 = vmul.f32 %v1293_v53, %v470_v25 }
  0xdb   : > { %v511_v60 = vmul.f32 %v1293_v53, %v477_v26  ;;  %v519_v16 = vmul.f32 %v1293_v53, %v485_v7 }
  0xdc   : > { %v1400_v0 = vadd.f32 %v496_v54, %v1218_v31  ;;  %v1403_v23 = vadd.f32 %v504_v55, %v1221_v32 }
  0xdd   : > { %v377_v1 = vpop.f32.mrf.mxu0  ;;  %v401_v2 = vpop.f32.mrf.mxu1  ;;  %v1406_v24 = vadd.f32 %v511_v60, %v1208_v29  ;;  %v1435_v50 = vadd.f32 %v519_v16, %v1224_v33  ;;  %v589_v60 = vadd.f32 %v1321_v8, %v1305_v58 }
  0xde   : > { %560 = vst [vmem:[%s1302_s10 + $0x20] sm:$0xff] %v1400_v0  ;;  %v378_v4 = vadd.f32 %v1289_v48, %v377_v1  ;;  %v402_v31 = vadd.f32 %v1289_v48, %v401_v2  ;;  %v422_v21 = vpop.f32.mrf.mxu2 }
  0xdf   : > { %568 = vst [vmem:[%s1302_s10 + $0x60] sm:$0xff] %v1403_v23  ;;  %v423_v32 = vadd.f32 %v1289_v48, %v422_v21 }
  0xe0   : > { %v463_v6 = vmax.f32 %v378_v4, 0.0  ;;  %v471_v29 = vmax.f32 %v402_v31, 0.0  ;;  %575 = vst [vmem:[%s1302_s10 + $0x98] sm:$0xff] %v1406_v24  ;;  %v590_v31 = vadd.f32 %v589_v60, %v1344_v56 }
  0xe1   : > { %v478_v30 = vmax.f32 %v423_v32, 0.0  ;;  %583 = vst [vmem:[%s1302_s10 + $0xd8] sm:$0xff] %v1435_v50 }
  0xe2   : > { %v497_v10 = vmul.f32 %v1293_v53, %v463_v6  ;;  %v505_v11 = vmul.f32 %v1293_v53, %v471_v29  ;;  %v591_v6 = vadd.f32 %v590_v31, %v1372_v13 }
  0xe3   : > { %v512_v15 = vmul.f32 %v1293_v53, %v478_v30 }
  0xe4   : > { %v529_v20 = vadd.f32 %v497_v10, %v1234_v35  ;;  %v1429_v27 = vadd.f32 %v505_v11, %v1237_v36  ;;  %v446_v35 = vpop.f32.mrf.mxu3 }
  0xe5   : > { %v380_v49 = vpop.f32.mrf.mxu0  ;;  %v404_v18 = vpop.f32.mrf.mxu1  ;;  %v1432_v28 = vadd.f32 %v512_v15, %v1227_v34  ;;  %v447_v52 = vadd.f32 %v1289_v48, %v446_v35 }
  0xe6   : > { %561 = vst [vmem:[%s1302_s10 + $0x28] sm:$0xff] %v529_v20  ;;  %v381_v51 = vadd.f32 %v1289_v48, %v380_v49  ;;  %v405_v25 = vadd.f32 %v1289_v48, %v404_v18  ;;  %v425_v26 = vpop.f32.mrf.mxu2 }
  0xe7   : > { %569 = vst [vmem:[%s1302_s10 + $0x68] sm:$0xff] %v1429_v27  ;;  %v426_v36 = vadd.f32 %v1289_v48, %v425_v26  ;;  %v486_v33 = vmax.f32 %v447_v52, 0.0 }
  0xe8   : > { %v464_v54 = vmax.f32 %v381_v51, 0.0  ;;  %v472_v55 = vmax.f32 %v405_v25, 0.0  ;;  %576 = vst [vmem:[%s1302_s10 + $0xa0] sm:$0xff] %v1432_v28 }
  0xe9   : > { %v479_v34 = vmax.f32 %v426_v36, 0.0  ;;  %v520_v4 = vmul.f32 %v1293_v53, %v486_v33 }
  0xea   : > { %v498_v61 = vmul.f32 %v1293_v53, %v464_v54  ;;  %v506_v1 = vmul.f32 %v1293_v53, %v472_v55 }
  0xeb   : > { %v513_v2 = vmul.f32 %v1293_v53, %v479_v34  ;;  %v1461_v8 = vadd.f32 %v520_v4, %v1240_v37 }
  0xec   : > { %v530_v21 = vadd.f32 %v498_v61, %v1250_v39  ;;  %v538_v22 = vadd.f32 %v506_v1, %v1253_v40  ;;  %v449_v30 = vpop.f32.mrf.mxu3 }
  0xed   : > { %v383_v32 = vpop.f32.mrf.mxu0  ;;  %v407_v5 = vpop.f32.mrf.mxu1  ;;  %v1458_v58 = vadd.f32 %v513_v2, %v1243_v38  ;;  %v450_v7 = vadd.f32 %v1289_v48, %v449_v30  ;;  %v592_v38 = vadd.f32 %v591_v6, %v1400_v0  ;;  %584 = vst [vmem:[%s1302_s10 + $0xe0] sm:$0xff] %v1461_v8  ;;  %v1008_v6 = vmov 0.0  }
  0xee   : > { %562 = vst [vmem:[%s1302_s10 + $0x30] sm:$0xff] %v530_v21  ;;  %v384_v29 = vadd.f32 %v1289_v48, %v383_v32  ;;  %v408_v56 = vadd.f32 %v1289_v48, %v407_v5  ;;  %v428_v39 = vpop.f32.mrf.mxu2 }
  0xef   : > { %570 = vst [vmem:[%s1302_s10 + $0x70] sm:$0xff] %v538_v22  ;;  %v429_v40 = vadd.f32 %v1289_v48, %v428_v39  ;;  %v487_v11 = vmax.f32 %v450_v7, 0.0  ;;  %v593_v15 = vadd.f32 %v592_v38, %v529_v20 }
  0xf0   : > { %v465_v10 = vmax.f32 %v384_v29, 0.0  ;;  %v473_v37 = vmax.f32 %v408_v56, 0.0  ;;  %577 = vst [vmem:[%s1302_s10 + $0xa8] sm:$0xff] %v1458_v58 }
  0xf1   : > { %v480_v13 = vmax.f32 %v429_v40, 0.0  ;;  %v521_v0 = vmul.f32 %v1293_v53, %v487_v11  ;;  %v594_v51 = vadd.f32 %v593_v15, %v530_v21  ;;  %292 = vst [vmem:[#allocation2] sm:$0x1] %v1008_v6 }
  0xf2   : > { %v499_v16 = vmul.f32 %v1293_v53, %v465_v10  ;;  %v507_v49 = vmul.f32 %v1293_v53, %v473_v37 }
  0xf3   : > { %v514_v18 = vmul.f32 %v1293_v53, %v480_v13  ;;  %v553_v36 = vadd.f32 %v521_v0, %v1256_v41 }
  0xf4   : > { %v531_v25 = vadd.f32 %v499_v16, %v1266_v43  ;;  %v539_v26 = vadd.f32 %v507_v49, %v1269_v44  ;;  %v452_v54 = vpop.f32.mrf.mxu3 }
  0xf5   : > { %v546_v35 = vadd.f32 %v514_v18, %v1259_v42  ;;  %v453_v34 = vadd.f32 %v1289_v48, %v452_v54  ;;  %585 = vst [vmem:[%s1302_s10 + $0xe8] sm:$0xff] %v553_v36 }
  0xf6   : > { %563 = vst [vmem:[%s1302_s10 + $0x38] sm:$0xff] %v531_v25  ;;  %v595_v20 = vadd.f32 %v594_v51, %v531_v25  ;;  %v431_v52 = vpop.f32.mrf.mxu2 }
  0xf7   : > { %571 = vst [vmem:[%s1302_s10 + $0x78] sm:$0xff] %v539_v26  ;;  %v432_v55 = vadd.f32 %v1289_v48, %v431_v52  ;;  %v488_v44 = vmax.f32 %v453_v34, 0.0 }
  0xf8   : > { %v596_v33 = vadd.f32 %v595_v20, %v1308_v59  ;;  %578 = vst [vmem:[%s1302_s10 + $0xb0] sm:$0xff] %v546_v35  ;;  %v588_v37 = vld [vmem:[#allocation2] sm:$0x1] }
  0xf9   : > { %v481_v43 = vmax.f32 %v432_v55, 0.0  ;;  %v522_v60 = vmul.f32 %v1293_v53, %v488_v44 }
  0xfa   : > { %v597_v42 = vadd.f32 %v596_v33, %v1324_v9 }
  0xfb   : > { %v515_v41 = vmul.f32 %v1293_v53, %v481_v43  ;;  %v554_v2 = vadd.f32 %v522_v60, %v1272_v45 }
  0xfc   : > { %v598_v61 = vadd.f32 %v597_v42, %v1347_v57  ;;  %v455_v4 = vpop.f32.mrf.mxu3 }
  0xfd   : > { %v547_v1 = vadd.f32 %v515_v41, %v1275_v46  ;;  %v456_v31 = vadd.f32 %v1289_v48, %v455_v4  ;;  %586 = vst [vmem:[%s1302_s10 + $0xf0] sm:$0xff] %v554_v2 }
  0xfe   : > { %v599_v59 = vadd.f32 %v598_v61, %v1375_v14 }
  0xff   : > { %579 = vst [vmem:[%s1302_s10 + $0xb8] sm:$0xff] %v547_v1  ;;  %v489_v9 = vmax.f32 %v456_v31, 0.0 }
 0x100   : > { %v600_v21 = vadd.f32 %v599_v59, %v1403_v23 }
 0x101   : > { %v523_v5 = vmul.f32 %v1293_v53, %v489_v9 }
 0x102   : > { %v601_v32 = vadd.f32 %v600_v21, %v1429_v27 }
 0x103   : > { %v555_v46 = vadd.f32 %v523_v5, %v1282_v47 }
 0x104   : > { %v602_v57 = vadd.f32 %v601_v32, %v538_v22 }
 0x105   : > { %587 = vst [vmem:[%s1302_s10 + $0xf8] sm:$0xff] %v555_v46 }
 0x106   : > { %v603_v45 = vadd.f32 %v602_v57, %v539_v26 }
 0x108   : > { %v604_v14 = vadd.f32 %v603_v45, %v1327_v12 }
 0x10a   : > { %v605_v29 = vadd.f32 %v604_v14, %v1350_v62 }
 0x10c   : > { %v606_v48 = vadd.f32 %v605_v29, %v1378_v17 }
 0x10e   : > { %v607_v23 = vadd.f32 %v606_v48, %v1406_v24 }
 0x110   : > { %v608_v56 = vadd.f32 %v607_v23, %v1432_v28 }
 0x112   : > { %v609_v27 = vadd.f32 %v608_v56, %v1458_v58 }
 0x114   : > { %v610_v53 = vadd.f32 %v609_v27, %v546_v35 }
 0x116   : > { %v611_v22 = vadd.f32 %v610_v53, %v547_v1 }
 0x118   : > { %v612_v39 = vadd.f32 %v611_v22, %v1353_v63 }
 0x11a   : > { %v613_v47 = vadd.f32 %v612_v39, %v1381_v19 }
 0x11c   : > { %v614_v30 = vadd.f32 %v613_v47, %v1409_v3 }
 0x11e   : > { %v615_v12 = vadd.f32 %v614_v30, %v1435_v50 }
 0x120   : > { %v616_v62 = vadd.f32 %v615_v12, %v1461_v8 }
 0x122   : > { %v617_v17 = vadd.f32 %v616_v62, %v553_v36 }
 0x124   : > { %v618_v24 = vadd.f32 %v617_v17, %v554_v2 }
 0x126   : > { %v619_v40 = vadd.f32 %v618_v24, %v555_v46 }
 0x128   : > { %v620_v28 = vrot.slane %v619_v40, 4 }
 0x12a   : > { %v621_v7 = vadd.f32 %v620_v28, %v619_v40 }
 0x12c   : > { %v622_v58 = vrot.slane %v621_v7, 2 }
 0x12e   : > { %v623_v38 = vadd.f32 %v622_v58, %v621_v7 }
 0x130   : > { %v624_v10 = vrot.slane %v623_v38, 1 }
 0x132   : > { %v625_v13 = vadd.f32 %v624_v10, %v623_v38 }
 0x134   : > { %v626_v63 = vadd.f32 %v625_v13, %v588_v37 }
 0x136   : > { %627 = vst [vmem:[#allocation2] sm:$0x1] %v626_v63 }
 0x13d   : > { %v631_v19 = vld [vmem:[#allocation2] sm:$0x1] }
 0x13e   : > { %632 = vst [vmem:[%s267_s13] sm:$0x1] %v631_v19 }
 0x13f   : > { %950 = shalt.err (!%p947_p9)
}
 0x140   : > { %844 = dma.vmem_to_hbm [thread:$0]  (%p1079_p4), %s658_s14, 16, %s660_s15, %s643_s16  }
 0x141 PF: > { %p856_p10 = scmp.ge.s32.totalorder %s1005_s23, 2  ;;  %s683_s10 = sand.u32 1, %s985_s18  }
 0x142   : > { %s684_s24 = scalar_lea.sflag [#allocation4], %s683_s10 }
 0x143   : > { %p851_p11 = pnand %p856_p10, %p1086_p8 }
 0x145   : > { %p852_p12 = pneg %p851_p11 }
 0x147   : > { %980 = dma.done.wait (%p852_p12), %s684_s24, 16  }
 0x148   : > { %982 = vsyncadd (%p852_p12), %s684_s24, 4294967280  ;;  %s20_s23 = sadd.s32 1, %s1005_s23   ;;  %s1561_s18 = smov %s989_s19 }
 0x149   : > { %p17_p13 = scmp.ge.s32.totalorder %s20_s23, 4   ;;  %s1562_s19 = smov %s993_s20 }
 0x14a   : > { %s1563_s20 = smov %s1092_s6  ;;  %s1564_s21 = smov %s1001_s22 }
 0x14b   : > { %s1565_s22 = smov %s1567_s26  ;;  %19 = sbr.rel (!%p17_p13) target bundleno = 5 (0x5), region = 96 }
 0x150   :  { %689 = vsyncpa [#allocation4], 1 }
 0x151   :  { %691 = vsyncpa [#allocation4 + $0x1], 1 }
 0x152   :  { %692 = vsyncpa [#allocation5], 1 }
 0x153   :  { %694 = vsyncpa [#allocation5 + $0x1], 1 }

</bundles_post_ra>
